<compile_context>
chip_gen: v6e
topology: v6e:2x2x1
jax: 0.10.0
libtpu: 0.0.40
codegen_flags: <defaults>
</compile_context>

<pallas_src>
import functools
import math

import jax
import jax.numpy as jnp
from jax.experimental import pallas as pl
from jax.experimental.pallas import tpu as pltpu


def _round_up(x, m):
    return ((x + m - 1) // m) * m


def _lane_pad(c, w):
    """Pad channel count c so that w * c_padded is a multiple of 128 (lane-dense)."""
    return _round_up(c, 128 // math.gcd(w, 128))


# ------------------------------ fused kernel --------------------------------


def _decoder_kernel(x2_ref, skip_ref, t_ref, wts_ref, prow_ref, o_ref,
                    *, H2, Cp, final_sigmoid, eps):
    f32, bf16 = jnp.float32, jnp.bfloat16
    M, L = skip_ref.shape           # M = B*H2 (batch stacked along rows), L = W2*Cp (=128)
    Lx2 = x2_ref.shape[1]           # 2 * W * Cin_p  (both transposed-conv row parities)
    T = t_ref.shape[1]
    W2 = L // Cp
    inv_n = 1.0 / float(M * W2)     # BatchNorm reduces over (N, H, W) = rows x lane groups

    # static row offsets into the packed bf16 weight slab
    o_wt = 0
    o_w1 = o_wt + Lx2
    o_w2 = o_w1 + 6 * L
    o_w3 = o_w2 + 3 * L
    o_wm = o_w3 + 3 * L

    def mm(a, b):                    # MXU GEMM: bf16 operands, f32 accumulation
        return jax.lax.dot_general(a.astype(bf16), b, (((1,), (0,)), ((), ())),
                                   preferred_element_type=f32)

    # Per-sample row index (H2 is a power of two here) -> masks realising the H zero
    # padding and zeroing rows that wrap across sample boundaries under circular roll.
    ridx = jax.lax.broadcasted_iota(jnp.int32, (M, L), 0)
    rin = jnp.bitwise_and(ridx, H2 - 1)
    keep_top = rin != 0              # row r-1 exists inside the same image
    keep_bot = rin != H2 - 1         # row r+1 exists inside the same image
    zero = jnp.zeros((M, L), f32)

    def taps3(x):
        """concat([x[r-1], x[r], x[r+1]], lanes) with zero H-padding -> (M, 3L)."""
        up = jnp.where(keep_top, pltpu.roll(x, 1, axis=0), zero)      # row r -> x[r-1]
        dn = jnp.where(keep_bot, pltpu.roll(x, M - 1, axis=0), zero)  # row r -> x[r+1]
        return jnp.concatenate([up, x, dn], axis=1)

    def batch_norm(x, g_row, b_row):
        """Training-mode BatchNorm2d (batch stats, biased var), one pass (sum / sumsq)."""
        s = jnp.sum(x, axis=0, keepdims=True)            # (1, L)
        q = jnp.sum(x * x, axis=0, keepdims=True)
        shift = Cp                                        # channel-aligned circular-roll
        while shift < L:                                  # all-reduce over W2 lane groups
            s = s + pltpu.roll(s, shift, axis=1)          # (W2 is a power of two)
            q = q + pltpu.roll(q, shift, axis=1)
            shift *= 2
        mean = s * inv_n
        var = q * inv_n - mean * mean
        inv = jax.lax.rsqrt(var + eps)
        return (x - mean) * (inv * g_row) + b_row

    # ConvTranspose2d(k=2, s=2): output-row parity folded into x2's lanes -> one GEMM.
    up = mm(x2_ref[...], wts_ref[o_wt:o_w1, :]) + prow_ref[0:1, :]

    # conv1 on cat(up, skip): 3 row taps x {up, skip} stacked along K -> one GEMM (K=6L).
    y = mm(jnp.concatenate([taps3(up), taps3(skip_ref[...])], axis=1),
           wts_ref[o_w1:o_w2, :]) + prow_ref[1:2, :]

    # conv2 -> BN1 -> ReLU                         (taps along K: one GEMM, K=3L)
    h = mm(taps3(y), wts_ref[o_w2:o_w3, :]) + prow_ref[2:3, :]
    h = jnp.maximum(batch_norm(h, prow_ref[5:6, :], prow_ref[6:7, :]), 0.0)

    # conv3 -> BN2 -> + residual(conv1 output) -> ReLU
    h = mm(taps3(h), wts_ref[o_w3:o_wm, :]) + prow_ref[3:4, :]
    h = jnp.maximum(batch_norm(h, prow_ref[7:8, :], prow_ref[8:9, :]) + y, 0.0)

    # time MLP (+ReLU), broadcast add over rows, final activation, bf16 lane-dense store.
    temb = jnp.maximum(mm(t_ref[...], wts_ref[o_wm:o_wm + T, :]) + prow_ref[4:5, :], 0.0)
    out = h + temb
    out = jax.nn.sigmoid(out) if final_sigmoid else jnp.maximum(out, 0.0)
    o_ref[...] = out.astype(o_ref.dtype)


# ------------------------------- parameters ----------------------------------


def init_params(key, in_c, out_c, time_emb_dim=32):
    ks = jax.random.split(key, 12)
    n = lambda k, shape, s=0.1: (s * jax.random.normal(k, shape)).astype(jnp.float32)
    cb_in = out_c + out_c
    return {
        # ConvTranspose2d(in_c, out_c, k=2, s=2): stored (in_c, kh, kw, out_c).
        # (PyTorch stores (in_c, out_c, kH, kW) -- transpose (0, 2, 3, 1) when importing.)
        "wt": n(ks[0], (in_c, 2, 2, out_c)),
        "bt": n(ks[1], (out_c,)),
        # conv_block 3x3 convs, HWIO layout (PyTorch OIHW -> transpose (2, 3, 1, 0)).
        "w1": n(ks[2], (3, 3, cb_in, out_c)),
        "b1": n(ks[3], (out_c,)),
        "w2": n(ks[4], (3, 3, out_c, out_c)),
        "b2": n(ks[5], (out_c,)),
        "w3": n(ks[6], (3, 3, out_c, out_c)),
        "b3": n(ks[7], (out_c,)),
        # time mlp: Linear(time_emb_dim, out_c), stored (in, out).
        "wm": n(ks[8], (time_emb_dim, out_c)),
        "bm": n(ks[9], (out_c,)),
        # BatchNorm affine params.
        "g1": 1.0 + n(ks[10], (out_c,)),
        "be1": jnp.zeros((out_c,), jnp.float32),
        "g2": 1.0 + n(ks[11], (out_c,)),
        "be2": jnp.zeros((out_c,), jnp.float32),
    }


def precompute_decoder_weights(params, H, W):
    """Build the packed lane-space weights.  Run ONCE per parameter update, not per step."""
    f32, bf16 = jnp.float32, jnp.bfloat16
    in_c, _, _, C = params["wt"].shape
    H2, W2 = 2 * H, 2 * W
    Cp = _lane_pad(C, W2)            # lane dim L = W2*Cp is a multiple of 128
    Cip = _lane_pad(in_c, W)
    L, Lx = W2 * Cp, W * Cip

    # ---- ConvTranspose2d -> (2*Lx, L): column scatter and kh parity folded into K ----
    wt = jnp.pad(params["wt"].astype(f32),
                 ((0, Cip - in_c), (0, 0), (0, 0), (0, Cp - C)))      # (Cip, 2, 2, Cp)
    j = jnp.arange(W)[:, None, None]
    J = jnp.arange(W2)[None, :, None]
    kw = jnp.arange(2)[None, None, :]
    sel_up = (J == 2 * j + kw).astype(f32)                            # (W, W2, 2)
    wt2 = jnp.einsum("ipwo,jJw->pjiJo", wt, sel_up).reshape(2 * Lx, L)

    # ---- banded lane-space 3x3 weights with the 3 row taps stacked along K ----
    # TODO(synk): O(W2^2 * C^2) per conv; at production W2/C (v7x 64MiB VMEM) keep compact
    # (3,3,Cin,Cout) weights and realise the W offsets with in-kernel lane rolls / W tiles.
    jo = jnp.arange(W2)[:, None, None]
    ji = jnp.arange(W2)[None, :, None]
    dx = jnp.arange(3)[None, None, :]
    selw = (ji == jo + dx - 1).astype(f32)       # W zero-padding folded into the weights

    def band(w_hwio, cin):                       # (3, 3, cin, C) -> (3L, L)
        wpad = jnp.pad(w_hwio.astype(f32),
                       ((0, 0), (0, 0), (0, Cp - cin), (0, Cp - C)))
        return jnp.einsum("yxio,jkx->ykijo", wpad, selw).reshape(3 * L, L)

    w1 = params["w1"].astype(f32)                # input channels: [up (0:C) | skip (C:2C)]
    w1stk = jnp.concatenate([band(w1[:, :, :C, :], C),
                             band(w1[:, :, C:, :], C)], axis=0)       # (6L, L)
    w2stk = band(params["w2"], C)
    w3stk = band(params["w3"], C)

    pad_c = lambda a: jnp.pad(a.astype(f32), [(0, 0)] * (a.ndim - 1) + [(0, Cp - C)])
    wm_row = jnp.tile(pad_c(params["wm"]), (1, W2))                   # (T, L)

    # one packed bf16 weight slab -> one DMA instead of five
    wts = jnp.concatenate([wt2, w1stk, w2stk, w3stk, wm_row], axis=0).astype(bf16)

    row = lambda v: jnp.tile(pad_c(v), W2)                            # (L,)
    prow = jnp.stack([row(params["bt"]), row(params["b1"]), row(params["b2"]),
                      row(params["b3"]), row(params["bm"]), row(params["g1"]),
                      row(params["be1"]), row(params["g2"]), row(params["be2"])])

    return {"wts": wts, "prow": prow}


# ------------------------------- JAX wrapper ---------------------------------


def decoder_forward(prepared, inp_nchw, skip_nchw, t, final_layer=False):
    f32 = jnp.float32
    B, in_c, H, W = inp_nchw.shape
    _, C, H2, W2 = skip_nchw.shape
    assert H2 == 2 * H and W2 == 2 * W
    # TODO(synk): non power-of-two H2/W2 needs a rem-based row mask and a non-doubling
    # lane reduction inside the kernel.
    assert (H2 & (H2 - 1)) == 0 and (W2 & (W2 - 1)) == 0
    Cp, Cip = _lane_pad(C, W2), _lane_pad(in_c, W)
    L, Lx, M = W2 * Cp, W * Cip, B * H2

    # --- layout glue: NCHW -> row-lane layout (row = b*H2 + r, lane = col*Cp + chan) ---
    x = jnp.transpose(inp_nchw, (0, 2, 3, 1)).astype(f32)
    x = jnp.pad(x, ((0, 0), (0, 0), (0, 0), (0, Cip - in_c))).reshape(B, H, Lx)
    # fold the transposed-conv output-row parity into lanes: row 2i+kh holds x[i] in half kh
    x2 = jnp.einsum("bhl,kp->bhkpl", x, jnp.eye(2, dtype=f32)).reshape(M, 2 * Lx)

    skip = jnp.transpose(skip_nchw, (0, 2, 3, 1)).astype(f32)
    skip = jnp.pad(skip, ((0, 0), (0, 0), (0, 0), (0, Cp - C))).reshape(M, L)

    t_rep = jnp.repeat(t.astype(f32), H2, axis=0)                     # (M, T)

    vmem = pl.BlockSpec(memory_space=pltpu.MemorySpace.VMEM)
    # Single ungridded call: the whole working set fits VMEM at these shapes.
    # TODO(synk): on v7x, grid over row tiles with dimension_semantics=("parallel",) plus a
    # two-pass BatchNorm so the work shards across both TensorCores.
    out_rl = pl.pallas_call(
        functools.partial(_decoder_kernel, H2=H2, Cp=Cp,
                          final_sigmoid=bool(final_layer), eps=1e-5),
        out_shape=jax.ShapeDtypeStruct((M, L), jnp.bfloat16),
        in_specs=[vmem] * 5,
        out_specs=vmem,
        compiler_params=pltpu.CompilerParams(vmem_limit_bytes=32 * 1024 * 1024),
    )(x2, skip, t_rep, prepared["wts"], prepared["prow"])

    out = out_rl.astype(f32).reshape(B, H2, W2, Cp)[..., :C]
    return jnp.transpose(out, (0, 3, 1, 2))                           # -> NCHW


# --------------------------- pure-JAX f32 reference --------------------------


def _reference_decoder(params, inp, skip, t, final_layer=False, eps=1e-5):
    hi = jax.lax.Precision.HIGHEST
    f32 = jnp.float32
    x, skip, t = inp.astype(f32), skip.astype(f32), t.astype(f32)

    up = jnp.einsum("bihw,ipqo->bohpwq", x, params["wt"], precision=hi)
    B, C, H, _, W, _ = up.shape
    up = up.reshape(B, C, 2 * H, 2 * W) + params["bt"][None, :, None, None]

    conv = lambda z, w, b: jax.lax.conv_general_dilated(
        z, w, (1, 1), "SAME", dimension_numbers=("NCHW", "HWIO", "NCHW"),
        precision=hi) + b[None, :, None, None]

    def bn(z, g, be):
        mean = jnp.mean(z, axis=(0, 2, 3), keepdims=True)
        var = jnp.mean((z - mean) ** 2, axis=(0, 2, 3), keepdims=True)
        return (z - mean) * jax.lax.rsqrt(var + eps) * g[None, :, None, None] \
               + be[None, :, None, None]

    z = jnp.concatenate([up, skip], axis=1)
    y = conv(z, params["w1"], params["b1"])
    h = jnp.maximum(bn(conv(y, params["w2"], params["b2"]),
                       params["g1"], params["be1"]), 0.0)
    h = jnp.maximum(bn(conv(h, params["w3"], params["b3"]),
                       params["g2"], params["be2"]) + y, 0.0)
    temb = jnp.maximum(jnp.matmul(t, params["wm"], precision=hi) + params["bm"], 0.0)
    h = h + temb[:, :, None, None]
    return jax.nn.sigmoid(h) if final_layer else jnp.maximum(h, 0.0)


if __name__ == "__main__":
    key = jax.random.PRNGKey(0)
    k_p, k_x, k_s, k_t = jax.random.split(key, 4)

    B, in_c, out_c = 2, 4, 4
    H = W = 8                       # input spatial; upsampled to 16x16
    time_emb_dim = 32

    params = init_params(k_p, in_c, out_c, time_emb_dim)
    inp = jax.random.normal(k_x, (B, in_c, H, W), jnp.float32)
    skip = jax.random.normal(k_s, (B, out_c, 2 * H, 2 * W), jnp.float32)
    t = jax.random.normal(k_t, (B, time_emb_dim), jnp.float32)

    # Weight expansion is hoisted out of the step path: once per parameter update.
    prepared = precompute_decoder_weights(params, H, W)
    jax.block_until_ready(prepared["wts"])

    fwd = jax.jit(functools.partial(decoder_forward, final_layer=False))
    out = fwd(prepared, inp, skip, t)
    jax.block_until_ready(out)
    assert out.shape == (B, out_c, 2 * H, 2 * W), out.shape

    fwd_sig = jax.jit(functools.partial(decoder_forward, final_layer=True))
    out_sig = fwd_sig(prepared, inp, skip, t)
    jax.block_until_ready(out_sig)
    assert out_sig.shape == (B, out_c, 2 * H, 2 * W), out_sig.shape

    # numerical check vs. pure-JAX f32 reference (loose tolerance for bf16 MXU operands)
    ref = _reference_decoder(params, inp, skip, t, final_layer=False)
    ref_sig = _reference_decoder(params, inp, skip, t, final_layer=True)
    err = float(jnp.max(jnp.abs(out - ref)))
    err_sig = float(jnp.max(jnp.abs(out_sig - ref_sig)))
    assert err < 1e-1 and err_sig < 1e-1, (err, err_sig)

    print("KERNEL_OK")
</pallas_src>

<mosaic_0001>
module attributes {stable_mosaic.version = 11 : i64} {
  func.func @_decoder_kernel(%arg0: memref<32x256xf32, #tpu.memory_space<vmem>>, %arg1: memref<32x128xf32, #tpu.memory_space<vmem>>, %arg2: memref<32x32xf32, #tpu.memory_space<vmem>>, %arg3: memref<1824x128xbf16, #tpu.memory_space<vmem>>, %arg4: memref<9x128xf32, #tpu.memory_space<vmem>>, %arg5: memref<32x128xbf16, #tpu.memory_space<vmem>>) attributes {dimension_semantics = [], scalar_prefetch = 0 : i64, scratch_operands = 0 : i64, tpu.core_type = #tpu.core_type<tc>} {
    %0 = tpu.iota {dimensions = array<i32: 0>} : vector<32x128xi32>
    %c15_i32 = arith.constant 15 : i32
    %1 = vector.broadcast %c15_i32 : i32 to vector<32x128xi32>
    %2 = arith.andi %0, %1 : vector<32x128xi32>
    %c0_i32 = arith.constant 0 : i32
    %3 = vector.broadcast %c0_i32 : i32 to vector<32x128xi32>
    %4 = arith.cmpi ne, %2, %3 : vector<32x128xi32>
    %c15_i32_0 = arith.constant 15 : i32
    %5 = vector.broadcast %c15_i32_0 : i32 to vector<32x128xi32>
    %6 = arith.cmpi ne, %2, %5 : vector<32x128xi32>
    %cst = arith.constant 0.000000e+00 : f32
    %7 = vector.broadcast %cst : f32 to vector<32x128xf32>
    %c0 = arith.constant 0 : index
    %c0_1 = arith.constant 0 : index
    %8 = vector.load %arg0[%c0, %c0_1] : memref<32x256xf32, #tpu.memory_space<vmem>>, vector<32x256xf32>
    %c0_2 = arith.constant 0 : index
    %c0_3 = arith.constant 0 : index
    %9 = vector.load %arg3[%c0_2, %c0_3] : memref<1824x128xbf16, #tpu.memory_space<vmem>>, vector<256x128xbf16>
    %10 = arith.truncf %8 : vector<32x256xf32> to vector<32x256xbf16>
    %cst_4 = arith.constant dense<0.000000e+00> : vector<32x128xf32>
    %11 = tpu.matmul %10, %9, %cst_4 {dimension_numbers = #tpu.dot_dimension_numbers<[1], [0], [0], [1], [0, 0, 1, 1], [], []>} : vector<32x256xbf16>, vector<256x128xbf16>, vector<32x128xf32> -> vector<32x128xf32>
    %c0_5 = arith.constant 0 : index
    %c0_6 = arith.constant 0 : index
    %12 = vector.load %arg4[%c0_5, %c0_6] : memref<9x128xf32, #tpu.memory_space<vmem>>, vector<1x128xf32>
    %13 = vector.broadcast %12 : vector<1x128xf32> to vector<32x128xf32>
    %14 = arith.addf %11, %13 : vector<32x128xf32>
    %c1_i32 = arith.constant 1 : i32
    %15 = tpu.dynamic_rotate %14 by %c1_i32 dim 0 : vector<32x128xf32>, i32 -> vector<32x128xf32>
    %16 = arith.select %4, %15, %7 : vector<32x128xi1>, vector<32x128xf32>
    %c31_i32 = arith.constant 31 : i32
    %17 = tpu.dynamic_rotate %14 by %c31_i32 dim 0 : vector<32x128xf32>, i32 -> vector<32x128xf32>
    %18 = arith.select %6, %17, %7 : vector<32x128xi1>, vector<32x128xf32>
    %19 = tpu.concatenate %16, %14, %18 in 1 : vector<32x128xf32>, vector<32x128xf32>, vector<32x128xf32> -> vector<32x384xf32>
    %c0_7 = arith.constant 0 : index
    %c0_8 = arith.constant 0 : index
    %20 = vector.load %arg1[%c0_7, %c0_8] : memref<32x128xf32, #tpu.memory_space<vmem>>, vector<32x128xf32>
    %c1_i32_9 = arith.constant 1 : i32
    %21 = tpu.dynamic_rotate %20 by %c1_i32_9 dim 0 : vector<32x128xf32>, i32 -> vector<32x128xf32>
    %22 = arith.select %4, %21, %7 : vector<32x128xi1>, vector<32x128xf32>
    %c31_i32_10 = arith.constant 31 : i32
    %23 = tpu.dynamic_rotate %20 by %c31_i32_10 dim 0 : vector<32x128xf32>, i32 -> vector<32x128xf32>
    %24 = arith.select %6, %23, %7 : vector<32x128xi1>, vector<32x128xf32>
    %25 = tpu.concatenate %22, %20, %24 in 1 : vector<32x128xf32>, vector<32x128xf32>, vector<32x128xf32> -> vector<32x384xf32>
    %26 = tpu.concatenate %19, %25 in 1 : vector<32x384xf32>, vector<32x384xf32> -> vector<32x768xf32>
    %c256 = arith.constant 256 : index
    %c0_11 = arith.constant 0 : index
    %27 = vector.load %arg3[%c256, %c0_11] : memref<1824x128xbf16, #tpu.memory_space<vmem>>, vector<768x128xbf16>
    %28 = arith.truncf %26 : vector<32x768xf32> to vector<32x768xbf16>
    %cst_12 = arith.constant dense<0.000000e+00> : vector<32x128xf32>
    %29 = tpu.matmul %28, %27, %cst_12 {dimension_numbers = #tpu.dot_dimension_numbers<[1], [0], [0], [1], [0, 0, 1, 1], [], []>} : vector<32x768xbf16>, vector<768x128xbf16>, vector<32x128xf32> -> vector<32x128xf32>
    %c1 = arith.constant 1 : index
    %c0_13 = arith.constant 0 : index
    %30 = vector.load %arg4[%c1, %c0_13] : memref<9x128xf32, #tpu.memory_space<vmem>>, vector<1x128xf32>
    %31 = vector.broadcast %30 : vector<1x128xf32> to vector<32x128xf32>
    %32 = arith.addf %29, %31 : vector<32x128xf32>
    %c1_i32_14 = arith.constant 1 : i32
    %33 = tpu.dynamic_rotate %32 by %c1_i32_14 dim 0 : vector<32x128xf32>, i32 -> vector<32x128xf32>
    %34 = arith.select %4, %33, %7 : vector<32x128xi1>, vector<32x128xf32>
    %c31_i32_15 = arith.constant 31 : i32
    %35 = tpu.dynamic_rotate %32 by %c31_i32_15 dim 0 : vector<32x128xf32>, i32 -> vector<32x128xf32>
    %36 = arith.select %6, %35, %7 : vector<32x128xi1>, vector<32x128xf32>
    %37 = tpu.concatenate %34, %32, %36 in 1 : vector<32x128xf32>, vector<32x128xf32>, vector<32x128xf32> -> vector<32x384xf32>
    %c1024 = arith.constant 1024 : index
    %c0_16 = arith.constant 0 : index
    %38 = vector.load %arg3[%c1024, %c0_16] : memref<1824x128xbf16, #tpu.memory_space<vmem>>, vector<384x128xbf16>
    %39 = arith.truncf %37 : vector<32x384xf32> to vector<32x384xbf16>
    %cst_17 = arith.constant dense<0.000000e+00> : vector<32x128xf32>
    %40 = tpu.matmul %39, %38, %cst_17 {dimension_numbers = #tpu.dot_dimension_numbers<[1], [0], [0], [1], [0, 0, 1, 1], [], []>} : vector<32x384xbf16>, vector<384x128xbf16>, vector<32x128xf32> -> vector<32x128xf32>
    %c2 = arith.constant 2 : index
    %c0_18 = arith.constant 0 : index
    %41 = vector.load %arg4[%c2, %c0_18] : memref<9x128xf32, #tpu.memory_space<vmem>>, vector<1x128xf32>
    %42 = vector.broadcast %41 : vector<1x128xf32> to vector<32x128xf32>
    %43 = arith.addf %40, %42 : vector<32x128xf32>
    %c5 = arith.constant 5 : index
    %c0_19 = arith.constant 0 : index
    %44 = vector.load %arg4[%c5, %c0_19] : memref<9x128xf32, #tpu.memory_space<vmem>>, vector<1x128xf32>
    %c6 = arith.constant 6 : index
    %c0_20 = arith.constant 0 : index
    %45 = vector.load %arg4[%c6, %c0_20] : memref<9x128xf32, #tpu.memory_space<vmem>>, vector<1x128xf32>
    %cst_21 = arith.constant dense<0.000000e+00> : vector<128xf32>
    %46 = vector.multi_reduction <add>, %43, %cst_21 [0] : vector<32x128xf32> to vector<128xf32>
    %47 = vector.shape_cast %46 : vector<128xf32> to vector<1x128xf32>
    %48 = arith.mulf %43, %43 : vector<32x128xf32>
    %cst_22 = arith.constant dense<0.000000e+00> : vector<128xf32>
    %49 = vector.multi_reduction <add>, %48, %cst_22 [0] : vector<32x128xf32> to vector<128xf32>
    %50 = vector.shape_cast %49 : vector<128xf32> to vector<1x128xf32>
    %c8_i32 = arith.constant 8 : i32
    %51 = tpu.dynamic_rotate %47 by %c8_i32 dim 1 : vector<1x128xf32>, i32 -> vector<1x128xf32>
    %52 = arith.addf %47, %51 : vector<1x128xf32>
    %c8_i32_23 = arith.constant 8 : i32
    %53 = tpu.dynamic_rotate %50 by %c8_i32_23 dim 1 : vector<1x128xf32>, i32 -> vector<1x128xf32>
    %54 = arith.addf %50, %53 : vector<1x128xf32>
    %c16_i32 = arith.constant 16 : i32
    %55 = tpu.dynamic_rotate %52 by %c16_i32 dim 1 : vector<1x128xf32>, i32 -> vector<1x128xf32>
    %56 = arith.addf %52, %55 : vector<1x128xf32>
    %c16_i32_24 = arith.constant 16 : i32
    %57 = tpu.dynamic_rotate %54 by %c16_i32_24 dim 1 : vector<1x128xf32>, i32 -> vector<1x128xf32>
    %58 = arith.addf %54, %57 : vector<1x128xf32>
    %c32_i32 = arith.constant 32 : i32
    %59 = tpu.dynamic_rotate %56 by %c32_i32 dim 1 : vector<1x128xf32>, i32 -> vector<1x128xf32>
    %60 = arith.addf %56, %59 : vector<1x128xf32>
    %c32_i32_25 = arith.constant 32 : i32
    %61 = tpu.dynamic_rotate %58 by %c32_i32_25 dim 1 : vector<1x128xf32>, i32 -> vector<1x128xf32>
    %62 = arith.addf %58, %61 : vector<1x128xf32>
    %c64_i32 = arith.constant 64 : i32
    %63 = tpu.dynamic_rotate %60 by %c64_i32 dim 1 : vector<1x128xf32>, i32 -> vector<1x128xf32>
    %64 = arith.addf %60, %63 : vector<1x128xf32>
    %c64_i32_26 = arith.constant 64 : i32
    %65 = tpu.dynamic_rotate %62 by %c64_i32_26 dim 1 : vector<1x128xf32>, i32 -> vector<1x128xf32>
    %66 = arith.addf %62, %65 : vector<1x128xf32>
    %cst_27 = arith.constant 0.001953125 : f32
    %67 = vector.broadcast %cst_27 : f32 to vector<1x128xf32>
    %68 = arith.mulf %64, %67 : vector<1x128xf32>
    %cst_28 = arith.constant 0.001953125 : f32
    %69 = vector.broadcast %cst_28 : f32 to vector<1x128xf32>
    %70 = arith.mulf %66, %69 : vector<1x128xf32>
    %71 = arith.mulf %68, %68 : vector<1x128xf32>
    %72 = arith.subf %70, %71 : vector<1x128xf32>
    %cst_29 = arith.constant 9.99999974E-6 : f32
    %73 = vector.broadcast %cst_29 : f32 to vector<1x128xf32>
    %74 = arith.addf %72, %73 : vector<1x128xf32>
    %75 = math.rsqrt %74 : vector<1x128xf32>
    %76 = vector.broadcast %68 : vector<1x128xf32> to vector<32x128xf32>
    %77 = arith.subf %43, %76 : vector<32x128xf32>
    %78 = arith.mulf %75, %44 : vector<1x128xf32>
    %79 = vector.broadcast %78 : vector<1x128xf32> to vector<32x128xf32>
    %80 = arith.mulf %77, %79 : vector<32x128xf32>
    %81 = vector.broadcast %45 : vector<1x128xf32> to vector<32x128xf32>
    %82 = arith.addf %80, %81 : vector<32x128xf32>
    %cst_30 = arith.constant 0.000000e+00 : f32
    %83 = vector.broadcast %cst_30 : f32 to vector<32x128xf32>
    %84 = arith.maximumf %82, %83 : vector<32x128xf32>
    %c1_i32_31 = arith.constant 1 : i32
    %85 = tpu.dynamic_rotate %84 by %c1_i32_31 dim 0 : vector<32x128xf32>, i32 -> vector<32x128xf32>
    %86 = arith.select %4, %85, %7 : vector<32x128xi1>, vector<32x128xf32>
    %c31_i32_32 = arith.constant 31 : i32
    %87 = tpu.dynamic_rotate %84 by %c31_i32_32 dim 0 : vector<32x128xf32>, i32 -> vector<32x128xf32>
    %88 = arith.select %6, %87, %7 : vector<32x128xi1>, vector<32x128xf32>
    %89 = tpu.concatenate %86, %84, %88 in 1 : vector<32x128xf32>, vector<32x128xf32>, vector<32x128xf32> -> vector<32x384xf32>
    %c1408 = arith.constant 1408 : index
    %c0_33 = arith.constant 0 : index
    %90 = vector.load %arg3[%c1408, %c0_33] : memref<1824x128xbf16, #tpu.memory_space<vmem>>, vector<384x128xbf16>
    %91 = arith.truncf %89 : vector<32x384xf32> to vector<32x384xbf16>
    %cst_34 = arith.constant dense<0.000000e+00> : vector<32x128xf32>
    %92 = tpu.matmul %91, %90, %cst_34 {dimension_numbers = #tpu.dot_dimension_numbers<[1], [0], [0], [1], [0, 0, 1, 1], [], []>} : vector<32x384xbf16>, vector<384x128xbf16>, vector<32x128xf32> -> vector<32x128xf32>
    %c3 = arith.constant 3 : index
    %c0_35 = arith.constant 0 : index
    %93 = vector.load %arg4[%c3, %c0_35] : memref<9x128xf32, #tpu.memory_space<vmem>>, vector<1x128xf32>
    %94 = vector.broadcast %93 : vector<1x128xf32> to vector<32x128xf32>
    %95 = arith.addf %92, %94 : vector<32x128xf32>
    %c7 = arith.constant 7 : index
    %c0_36 = arith.constant 0 : index
    %96 = vector.load %arg4[%c7, %c0_36] : memref<9x128xf32, #tpu.memory_space<vmem>>, vector<1x128xf32>
    %c8 = arith.constant 8 : index
    %c0_37 = arith.constant 0 : index
    %97 = vector.load %arg4[%c8, %c0_37] : memref<9x128xf32, #tpu.memory_space<vmem>>, vector<1x128xf32>
    %cst_38 = arith.constant dense<0.000000e+00> : vector<128xf32>
    %98 = vector.multi_reduction <add>, %95, %cst_38 [0] : vector<32x128xf32> to vector<128xf32>
    %99 = vector.shape_cast %98 : vector<128xf32> to vector<1x128xf32>
    %100 = arith.mulf %95, %95 : vector<32x128xf32>
    %cst_39 = arith.constant dense<0.000000e+00> : vector<128xf32>
    %101 = vector.multi_reduction <add>, %100, %cst_39 [0] : vector<32x128xf32> to vector<128xf32>
    %102 = vector.shape_cast %101 : vector<128xf32> to vector<1x128xf32>
    %c8_i32_40 = arith.constant 8 : i32
    %103 = tpu.dynamic_rotate %99 by %c8_i32_40 dim 1 : vector<1x128xf32>, i32 -> vector<1x128xf32>
    %104 = arith.addf %99, %103 : vector<1x128xf32>
    %c8_i32_41 = arith.constant 8 : i32
    %105 = tpu.dynamic_rotate %102 by %c8_i32_41 dim 1 : vector<1x128xf32>, i32 -> vector<1x128xf32>
    %106 = arith.addf %102, %105 : vector<1x128xf32>
    %c16_i32_42 = arith.constant 16 : i32
    %107 = tpu.dynamic_rotate %104 by %c16_i32_42 dim 1 : vector<1x128xf32>, i32 -> vector<1x128xf32>
    %108 = arith.addf %104, %107 : vector<1x128xf32>
    %c16_i32_43 = arith.constant 16 : i32
    %109 = tpu.dynamic_rotate %106 by %c16_i32_43 dim 1 : vector<1x128xf32>, i32 -> vector<1x128xf32>
    %110 = arith.addf %106, %109 : vector<1x128xf32>
    %c32_i32_44 = arith.constant 32 : i32
    %111 = tpu.dynamic_rotate %108 by %c32_i32_44 dim 1 : vector<1x128xf32>, i32 -> vector<1x128xf32>
    %112 = arith.addf %108, %111 : vector<1x128xf32>
    %c32_i32_45 = arith.constant 32 : i32
    %113 = tpu.dynamic_rotate %110 by %c32_i32_45 dim 1 : vector<1x128xf32>, i32 -> vector<1x128xf32>
    %114 = arith.addf %110, %113 : vector<1x128xf32>
    %c64_i32_46 = arith.constant 64 : i32
    %115 = tpu.dynamic_rotate %112 by %c64_i32_46 dim 1 : vector<1x128xf32>, i32 -> vector<1x128xf32>
    %116 = arith.addf %112, %115 : vector<1x128xf32>
    %c64_i32_47 = arith.constant 64 : i32
    %117 = tpu.dynamic_rotate %114 by %c64_i32_47 dim 1 : vector<1x128xf32>, i32 -> vector<1x128xf32>
    %118 = arith.addf %114, %117 : vector<1x128xf32>
    %cst_48 = arith.constant 0.001953125 : f32
    %119 = vector.broadcast %cst_48 : f32 to vector<1x128xf32>
    %120 = arith.mulf %116, %119 : vector<1x128xf32>
    %cst_49 = arith.constant 0.001953125 : f32
    %121 = vector.broadcast %cst_49 : f32 to vector<1x128xf32>
    %122 = arith.mulf %118, %121 : vector<1x128xf32>
    %123 = arith.mulf %120, %120 : vector<1x128xf32>
    %124 = arith.subf %122, %123 : vector<1x128xf32>
    %cst_50 = arith.constant 9.99999974E-6 : f32
    %125 = vector.broadcast %cst_50 : f32 to vector<1x128xf32>
    %126 = arith.addf %124, %125 : vector<1x128xf32>
    %127 = math.rsqrt %126 : vector<1x128xf32>
    %128 = vector.broadcast %120 : vector<1x128xf32> to vector<32x128xf32>
    %129 = arith.subf %95, %128 : vector<32x128xf32>
    %130 = arith.mulf %127, %96 : vector<1x128xf32>
    %131 = vector.broadcast %130 : vector<1x128xf32> to vector<32x128xf32>
    %132 = arith.mulf %129, %131 : vector<32x128xf32>
    %133 = vector.broadcast %97 : vector<1x128xf32> to vector<32x128xf32>
    %134 = arith.addf %132, %133 : vector<32x128xf32>
    %135 = arith.addf %134, %32 : vector<32x128xf32>
    %cst_51 = arith.constant 0.000000e+00 : f32
    %136 = vector.broadcast %cst_51 : f32 to vector<32x128xf32>
    %137 = arith.maximumf %135, %136 : vector<32x128xf32>
    %c0_52 = arith.constant 0 : index
    %c0_53 = arith.constant 0 : index
    %138 = vector.load %arg2[%c0_52, %c0_53] : memref<32x32xf32, #tpu.memory_space<vmem>>, vector<32x32xf32>
    %c1792 = arith.constant 1792 : index
    %c0_54 = arith.constant 0 : index
    %139 = vector.load %arg3[%c1792, %c0_54] : memref<1824x128xbf16, #tpu.memory_space<vmem>>, vector<32x128xbf16>
    %140 = arith.truncf %138 : vector<32x32xf32> to vector<32x32xbf16>
    %cst_55 = arith.constant dense<0.000000e+00> : vector<32x128xf32>
    %141 = tpu.matmul %140, %139, %cst_55 {dimension_numbers = #tpu.dot_dimension_numbers<[1], [0], [0], [1], [0, 0, 1, 1], [], []>} : vector<32x32xbf16>, vector<32x128xbf16>, vector<32x128xf32> -> vector<32x128xf32>
    %c4 = arith.constant 4 : index
    %c0_56 = arith.constant 0 : index
    %142 = vector.load %arg4[%c4, %c0_56] : memref<9x128xf32, #tpu.memory_space<vmem>>, vector<1x128xf32>
    %143 = vector.broadcast %142 : vector<1x128xf32> to vector<32x128xf32>
    %144 = arith.addf %141, %143 : vector<32x128xf32>
    %cst_57 = arith.constant 0.000000e+00 : f32
    %145 = vector.broadcast %cst_57 : f32 to vector<32x128xf32>
    %146 = arith.maximumf %144, %145 : vector<32x128xf32>
    %147 = arith.addf %137, %146 : vector<32x128xf32>
    %cst_58 = arith.constant 0.000000e+00 : f32
    %148 = vector.broadcast %cst_58 : f32 to vector<32x128xf32>
    %149 = arith.maximumf %147, %148 : vector<32x128xf32>
    %150 = arith.truncf %149 : vector<32x128xf32> to vector<32x128xbf16>
    %c0_59 = arith.constant 0 : index
    %c0_60 = arith.constant 0 : index
    %151 = vector.load %arg5[%c0_59, %c0_60] : memref<32x128xbf16, #tpu.memory_space<vmem>>, vector<32x128xbf16>
    tpu.vector_store %arg5[%c0_59, %c0_60], %150 {strides = array<i32>} : memref<32x128xbf16, #tpu.memory_space<vmem>>, vector<32x128xbf16>,
    return
  }
}

</mosaic_0001>

<bundles_post_ra>
// kernel: decoder_forward.1
= control target key start
LH: loop header
LB: loop body
LE: loop exit
PB: predicated region body
PF: predicated region fallthrough
CT: control target
= control target key end

     0   :  { %v21_v49 = vlaneseq  ;;  %vm2326_vm2 = vmmov 1   ;;  %s2327_s14 = smov 8   ;;  %s2328_s15 = smov 16   ;;  %vm1681_vm11 = vcmask 261120   ;;  %s3047_s3 = inlined_call_operand.vmem [shape: bf16[1824,128], index: 3, kind: input, shape index: {}]   ;;  %s3048_s0 = inlined_call_operand.vmem [shape: f32[32,256], index: 0, kind: input, shape index: {}]   ;;  %s3049_s1 = inlined_call_operand.vmem [shape: f32[32,128], index: 1, kind: input, shape index: {}]   ;;  %s3050_s4 = inlined_call_operand.vmem [shape: f32[9,128], index: 4, kind: input, shape index: {}]   ;;  %s3051_s2 = inlined_call_operand.vmem [shape: f32[32,32], index: 2, kind: input, shape index: {}]   ;;  %s3052_s5 = inlined_call_operand.vmem [shape: bf16[32,128], index: 5, kind: output, shape index: {}]  }
   0x1   :  { %v2208_v0 = vld [vmem:[%s3047_s3 + $0x78] sm:$0xff]   ;;  %v2210_v2 = vld [vmem:[%s3047_s3 + $0x70] sm:$0xff]   ;;  %v2212_v4 = vld [vmem:[%s3047_s3 + $0x68] sm:$0xff]   ;;  %s2329_s16 = smov 32   ;;  %s2330_s25 = smov 64  }
   0x2   :  { %v2209_v1 = vld [vmem:[%s3047_s3 + $0x38] sm:$0xff]   ;;  %1963 = vmatprep.subr.bf16.mxu0 %v2208_v0  ;;  %v2211_v3 = vld [vmem:[%s3047_s3 + $0x30] sm:$0xff]   ;;  %v2213_v5 = vld [vmem:[%s3047_s3 + $0x28] sm:$0xff]   ;;  %v2508_v54 = vshrl.u32 %v21_v49, 7 }
   0x3   :  { %1964 = vmatpush3.bf16.msra.mxu0 %v2209_v1  ;;  %v2214_v6 = vld [vmem:[%s3047_s3 + $0x60] sm:$0xff]   ;;  %v2216_v8 = vld [vmem:[%s3047_s3 + $0x58] sm:$0xff]   ;;  %v2218_v10 = vld [vmem:[%s3047_s3 + $0x50] sm:$0xff]  }
   0x4   :  { %1965 = vmatprep.subr.bf16.mxu0 %v2210_v2  ;;  %v2215_v7 = vld [vmem:[%s3047_s3 + $0x20] sm:$0xff]   ;;  %v2217_v9 = vld [vmem:[%s3047_s3 + $0x18] sm:$0xff]   ;;  %v39_v11 = vld [vmem:[%s3048_s0 + $0x8] sm:$0xff]  ;;  %v26_v1 = vand.u32 15, %v2508_v54  ;;  %vm236_vm0 = vcmp.lt.s32.totalorder %v2508_v54, 1  ;;  %vm249_vm4 = vcmp.lt.s32.totalorder %v2508_v54, 7 }
   0x5   :  { %v41_v12 = vld [vmem:[%s3048_s0 + $0x18] sm:$0xff]  ;;  %v2219_v14 = vld [vmem:[%s3047_s3 + $0x10] sm:$0xff]   ;;  %v2220_v15 = vld [vmem:[%s3047_s3 + $0x48] sm:$0xff]  }
   0x6   :  { %v79_v13 = vpack.c.bf16 %v41_v12, %v39_v11  ;;  %v2226_v16 = vld [vmem:[%s3047_s3 + $0xf8] sm:$0xff]   ;;  %v2221_v18 = vld [vmem:[%s3047_s3 + $0x8] sm:$0xff]   ;;  %v2222_v19 = vld [vmem:[%s3047_s3 + $0x40] sm:$0xff]   ;;  %vm30_vm1 = vcmp.ne.s32.totalorder %v26_v1, 0 }
   0x7   :  { %1966 = vmatpush3.bf16.msra.mxu0 %v2211_v3  ;;  %v2227_v17 = vld [vmem:[%s3047_s3 + $0xb8] sm:$0xff]   ;;  %1991 = vmatprep.subr.bf16.mxu1 %v2226_v16  ;;  %v2223_v20 = vld [vmem:[%s3047_s3] sm:$0xff]   ;;  %v40_v22 = vld [vmem:[%s3048_s0 + $0x10] sm:$0xff] }
   0x8   :  { %1967 = vmatprep.subr.bf16.mxu0 %v2212_v4  ;;  %215 = vmatprep.mubr.bf16.mxu0 %v79_v13  ;;  %v38_v21 = vld [vmem:[%s3048_s0] sm:$0xff]  ;;  %v2230_v23 = vld [vmem:[%s3047_s3 + $0xf0] sm:$0xff]   ;;  %v43_v24 = vld [vmem:[%s3048_s0 + $0x28] sm:$0xff] }
   0x9   :  { %1992 = vmatpush3.bf16.msra.mxu1 %v2227_v17  ;;  %v2231_v25 = vld [vmem:[%s3047_s3 + $0xb0] sm:$0xff]   ;;  %v45_v26 = vld [vmem:[%s3048_s0 + $0x38] sm:$0xff]  ;;  %v2234_v29 = vld [vmem:[%s3047_s3 + $0xe8] sm:$0xff]   ;;  %v78_v30 = vpack.c.bf16 %v40_v22, %v38_v21 }
   0xa   :  { %1993 = vmatprep.subr.bf16.mxu1 %v2230_v23  ;;  %v2224_v27 = vld [vmem:[%s3047_s3 + $0x178] sm:$0xff]   ;;  %v2228_v31 = vld [vmem:[%s3047_s3 + $0x170] sm:$0xff]   ;;  %v81_v32 = vpack.c.bf16 %v45_v26, %v43_v24  ;;  %v42_v33 = vld [vmem:[%s3048_s0 + $0x20] sm:$0xff] }
   0xb   :  { %1968 = vmatpush3.bf16.msra.mxu0 %v2213_v5  ;;  %v2225_v28 = vld [vmem:[%s3047_s3 + $0x138] sm:$0xff]   ;;  %v44_v34 = vld [vmem:[%s3048_s0 + $0x30] sm:$0xff]  ;;  %v2232_v36 = vld [vmem:[%s3047_s3 + $0x168] sm:$0xff]  }
   0xc   :  { %1969 = vmatprep.subr.bf16.mxu0 %v2214_v6  ;;  %v2229_v35 = vld [vmem:[%s3047_s3 + $0x130] sm:$0xff]   ;;  %v2233_v37 = vld [vmem:[%s3047_s3 + $0x128] sm:$0xff]   ;;  %v80_v38 = vpack.c.bf16 %v44_v34, %v42_v33  ;;  %v2236_v40 = vld [vmem:[%s3047_s3 + $0x160] sm:$0xff]   ;;  %v23_v33 = vadd.s32 8, %v2508_v54 }
   0xd   :  { %1994 = vmatpush3.bf16.msra.mxu1 %v2231_v25  ;;  %v2235_v39 = vld [vmem:[%s3047_s3 + $0xa8] sm:$0xff]   ;;  %v2237_v41 = vld [vmem:[%s3047_s3 + $0x120] sm:$0xff]   ;;  %v2240_v44 = vld [vmem:[%s3047_s3 + $0x158] sm:$0xff]  }
   0xe   :  { %1995 = vmatprep.subr.bf16.mxu1 %v2234_v29  ;;  %v2238_v42 = vld [vmem:[%s3047_s3 + $0xe0] sm:$0xff]   ;;  %v2241_v45 = vld [vmem:[%s3047_s3 + $0x118] sm:$0xff]   ;;  %v2244_v48 = vld [vmem:[%s3047_s3 + $0x150] sm:$0xff]  }
   0xf   :  { %1970 = vmatpush3.bf16.msra.mxu0 %v2215_v7  ;;  %v2239_v43 = vld [vmem:[%s3047_s3 + $0xa0] sm:$0xff]   ;;  %v2242_v46 = vld [vmem:[%s3047_s3 + $0xd8] sm:$0xff]   ;;  %v2245_v50 = vld [vmem:[%s3047_s3 + $0x110] sm:$0xff]  }
  0x10   :  { %1971 = vmatprep.subr.bf16.mxu0 %v2216_v8  ;;  %v2243_v47 = vld [vmem:[%s3047_s3 + $0x98] sm:$0xff]   ;;  %v2246_v51 = vld [vmem:[%s3047_s3 + $0xd0] sm:$0xff]   ;;  %v2248_v53 = vld [vmem:[%s3047_s3 + $0x148] sm:$0xff]  }
  0x11   :  { %1996 = vmatpush3.bf16.msra.mxu1 %v2235_v39  ;;  %v2247_v52 = vld [vmem:[%s3047_s3 + $0x90] sm:$0xff]   ;;  %v2249_v55 = vld [vmem:[%s3047_s3 + $0x108] sm:$0xff]   ;;  %v2519_v57 = vld [vmem:[%s3049_s1] sm:$0xff] }
  0x12   :  { %1997 = vmatprep.subr.bf16.mxu1 %v2238_v42  ;;  %v2250_v56 = vld [vmem:[%s3047_s3 + $0xc8] sm:$0xff]   ;;  %v2252_v60 = vld [vmem:[%s3047_s3 + $0x140] sm:$0xff]   ;;  %v2535_v61 = vld [vmem:[%s3049_s1 + $0x18] sm:$0xff]  ;;  %v262_v62 = vrot.slane %v2519_v57, 7 }
  0x13   :  { %1972 = vmatpush3.bf16.msra.mxu0 %v2217_v9  ;;  %v2524_v58 = vld [vmem:[%s3049_s1 + $0x8] sm:$0xff]  ;;  %v2253_v0 = vld [vmem:[%s3047_s3 + $0x100] sm:$0xff]   ;;  %v265_v2 = vrot.slane %v2535_v61, 7  ;;  %vm2553_vm3 = vmpackc.low %vm2326_vm2, %vm30_vm1  ;;  %v277_v22 = vrot.slane %v2535_v61, 1 }
  0x14   :  { %1973 = vmatprep.subr.bf16.mxu0 %v2218_v10  ;;  %v2251_v59 = vld [vmem:[%s3047_s3 + $0x88] sm:$0xff]   ;;  %v263_v63 = vrot.slane %v2524_v58, 7  ;;  %v2254_v4 = vld [vmem:[%s3047_s3 + $0xc0] sm:$0xff]   ;;  %v2256_v9 = vld [vmem:[%s3047_s3 + $0x1f8] sm:$0xff]   ;;  %v275_v16 = vrot.slane %v2524_v58, 1  ;;  %v386_v21 = vpack.c.bf16 %v2524_v58, %v2519_v57 }
  0x15   :  { %1998 = vmatpush3.bf16.msra.mxu1 %v2239_v43  ;;  %v269_v5 = vsel %vm236_vm0, %v265_v2, %v262_v62  ;;  %v2255_v8 = vld [vmem:[%s3047_s3 + $0x80] sm:$0xff]   ;;  %v2568_v10 = vld [vmem:[%s3049_s1 + $0x10] sm:$0xff] }
  0x16   :  { %1999 = vmatprep.subr.bf16.mxu1 %v2242_v46  ;;  %v268_v3 = vsel %vm236_vm0, %v262_v62, %v263_v63  ;;  %v264_v11 = vrot.slane %v2568_v10, 7  ;;  %v276_v17 = vrot.slane %v2568_v10, 1  ;;  %v392_v23 = vpack.c.bf16 %v2535_v61, %v2568_v10  ;;  %v2275_v58 = vld [vmem:[%s3047_s3 + $0x270] sm:$0xff]  }
  0x17   :  { %1974 = vmatpush3.bf16.msra.mxu0 %v2219_v14  ;;  %v1846_v7 = vpack.c.bf16 %v268_v3, %v269_v5  ;;  %v2257_v5 = vld [vmem:[%s3047_s3 + $0x1b8] sm:$0xff]   ;;  %v2276_v61 = vld [vmem:[%s3047_s3 + $0x2b0] sm:$0xff]  }
  0x18   :  { %1975 = vmatprep.subr.bf16.mxu0 %v2220_v15  ;;  %v266_v12 = vsel %vm236_vm0, %v264_v11, %v265_v2  ;;  %v267_v13 = vsel %vm236_vm0, %v263_v63, %v264_v11  ;;  %v274_v15 = vrot.slane %v2519_v57, 1  ;;  %v2596_v24 = vsel %vm249_vm4, %v276_v17, %v277_v22  ;;  %v2274_v57 = vld [vmem:[%s3047_s3 + $0x238] sm:$0xff]   ;;  %v2277_v10 = vld [vmem:[%s3047_s3 + $0x230] sm:$0xff]  }
  0x19   :  { %2000 = vmatpush3.bf16.msra.mxu1 %v2243_v47  ;;  %v1852_v14 = vpack.c.bf16 %v266_v12, %v267_v13 }
  0x1a   :  { %2001 = vmatprep.subr.bf16.mxu1 %v2246_v51  ;;  %v2600_v25 = vsel %vm249_vm4, %v277_v22, %v274_v15 }
  0x1b   :  { %1976 = vmatpush3.bf16.msra.mxu0 %v2221_v18  ;;  %v2581_v18 = vsel %vm249_vm4, %v275_v16, %v276_v17  ;;  %v1861_v26 = vpack.c.bf16 %v2600_v25, %v2596_v24  ;;  %v2260_v17 = vld [vmem:[%s3047_s3 + $0x1e8] sm:$0xff]   ;;  %v2281_v25 = vld [vmem:[%s3047_s3 + $0x260] sm:$0xff]  }
  0x1c   :  { %1977 = vmatprep.subr.bf16.mxu0 %v2222_v19  ;;  %v2585_v19 = vsel %vm249_vm4, %v274_v15, %v275_v16  ;;  %v2259_v15 = vld [vmem:[%s3047_s3 + $0x1b0] sm:$0xff]   ;;  %v2280_v24 = vld [vmem:[%s3047_s3 + $0x228] sm:$0xff]  }
  0x1d   :  { %2002 = vmatpush3.bf16.msra.mxu1 %v2247_v52 }
  0x1e   :  { %2003 = vmatprep.subr.bf16.mxu1 %v2250_v56 }
  0x1f   :  { %1978 = vmatpush3.bf16.msra.mxu0 %v2223_v20  ;;  %v1858_v20 = vpack.c.bf16 %v2581_v18, %v2585_v19  ;;  %v2267_v18 = vld [vmem:[%s3047_s3 + $0x190] sm:$0xff]   ;;  %v2268_v19 = vld [vmem:[%s3047_s3 + $0x1c8] sm:$0xff]  }
  0x20   :  { %2019 = vmatprep.subr.bf16.mxu0 %v2224_v27 }
  0x21   :  { %2004 = vmatpush3.bf16.msra.mxu1 %v2251_v59 }
  0x22   :  { %216 = vmatmul.mubr.bf16.vlgmr.msra.gmra.mxu0 %v78_v30  ;;  %2005 = vmatprep.subr.bf16.mxu1 %v2254_v4 }
  0x23   :  { %223 = vmatprep.mubr.bf16.mxu0 %v81_v32  ;;  %2020 = vmatpush3.bf16.msra.mxu0 %v2225_v28 }
  0x24   :  { %2021 = vmatprep.subr.bf16.mxu0 %v2228_v31  ;;  %v1773_v31 = vld [vmem:[%s3050_s4] ss:$0 sm:$0xff] }
  0x25   :  { %2006 = vmatpush3.bf16.msra.mxu1 %v2255_v8  ;;  %v2258_v8 = vld [vmem:[%s3047_s3 + $0x1f0] sm:$0xff]  }
  0x26   :  { %2047 = vmatprep.subr.bf16.mxu1 %v2256_v9 }
  0x27   :  { %2022 = vmatpush3.bf16.msra.mxu0 %v2229_v35  ;;  %v24_v35 = vadd.s32 16, %v2508_v54 }
  0x28   :  { %2023 = vmatprep.subr.bf16.mxu0 %v2232_v36 }
  0x29   :  { %v28_v43 = vand.u32 15, %v24_v35  ;;  %v2270_v35 = vld [vmem:[%s3047_s3 + $0x1c0] sm:$0xff]  }
  0x2a   :  { %224 = vmatmul.mubr.bf16.gmra.mxu0 %v80_v38 }
  0x2b   :  { %2024 = vmatpush3.bf16.msra.mxu0 %v2233_v37  ;;  %1847 = vmatprep.mubr.msk.bf16.mxu0 %vm2553_vm3, %v1846_v7  ;;  %vm32_vm6 = vcmp.ne.s32.totalorder %v28_v43, 0  ;;  %v2287_v43 = vld [vmem:[%s3047_s3 + $0x250] sm:$0xff]  }
  0x2c   :  { %2025 = vmatprep.subr.bf16.mxu0 %v2236_v40  ;;  %v27_v40 = vand.u32 15, %v23_v33  ;;  %vm2620_vm8 = vmpackc.low %vm2326_vm2, %vm32_vm6  ;;  %v2265_v33 = vld [vmem:[%s3047_s3 + $0x198] sm:$0xff]  }
  0x2e   :  { %vm35_vm5 = vcmp.ne.s32.totalorder %v27_v40, 15  ;;  %v2284_v40 = vld [vmem:[%s3047_s3 + $0x258] sm:$0xff]  }
  0x2f   :  { %2026 = vmatpush3.bf16.msra.mxu0 %v2237_v41  ;;  %vm2615_vm7 = vmpackc.low %vm35_vm5, %vm2326_vm2 }
  0x30   :  { %2027 = vmatprep.subr.bf16.mxu0 %v2240_v44 }
  0x33   :  { %2028 = vmatpush3.bf16.msra.mxu0 %v2241_v45 }
  0x34   :  { %2029 = vmatprep.subr.bf16.mxu0 %v2244_v48  ;;  %v25_v48 = vadd.s32 24, %v2508_v54 }
  0x36   :  { %v29_v63 = vand.u32 15, %v25_v48  ;;  %v2292_v48 = vld [vmem:[%s3047_s3 + $0x208] sm:$0xff]  }
  0x37   :  { %2030 = vmatpush3.bf16.msra.mxu0 %v2245_v50 }
  0x38   :  { %2031 = vmatprep.subr.bf16.mxu0 %v2248_v53  ;;  %vm37_vm9 = vcmp.ne.s32.totalorder %v29_v63, 15 }
  0x39   :  { %vm2645_vm10 = vmpackc.low %vm37_vm9, %vm2326_vm2 }
  0x3b   :  { %2032 = vmatpush3.bf16.msra.mxu0 %v2249_v55 }
  0x3c   :  { %2033 = vmatprep.subr.bf16.mxu0 %v2252_v60 }
  0x3f   :  { %2034 = vmatpush3.bf16.msra.mxu0 %v2253_v0 }
  0xe2   :  { %v1979_v27 = vpop.f32.mrf.mxu0 }
  0xe4   :  { %v1980_v28 = vpop.f32.mrf.mxu0 }
  0xe5   :  { %v1981_v30 = vadd.f32 %v1980_v28, %v1979_v27  ;;  %v2261_v28 = vld [vmem:[%s3047_s3 + $0x1a8] sm:$0xff]  }
  0xe6   :  { %v1982_v29 = vpop.f32.mrf.mxu0 }
  0xe7   :  { %v218_v37 = vadd.f32 %v1981_v30, %v1773_v31  ;;  %v2262_v30 = vld [vmem:[%s3047_s3 + $0x1e0] sm:$0xff]  }
  0xe8   :  { %v1983_v32 = vpop.f32.mrf.mxu0 }
  0xe9   :  { %v1984_v34 = vadd.f32 %v1983_v32, %v1982_v29  ;;  %v245_v49 = vrot.slane %v218_v37, 1  ;;  %v232_v0 = vrot.slane %v218_v37, 7  ;;  %v2264_v32 = vld [vmem:[%s3047_s3 + $0x1d8] sm:$0xff]  }
  0xea   :  { %v1985_v36 = vpop.f32.mrf.mxu0 }
  0xeb   :  { %v221_v38 = vadd.f32 %v1984_v34, %v1773_v31  ;;  %v2266_v34 = vld [vmem:[%s3047_s3 + $0x1d0] sm:$0xff]  }
  0xec   :  { %v1986_v39 = vpop.f32.mrf.mxu0 }
  0xed   :  { %v1987_v41 = vadd.f32 %v1986_v39, %v1985_v36  ;;  %v383_v42 = vpack.c.bf16 %v221_v38, %v218_v37  ;;  %v246_v45 = vrot.slane %v221_v38, 1  ;;  %v233_v52 = vrot.slane %v221_v38, 7  ;;  %v2271_v36 = vld [vmem:[%s3047_s3 + $0x180] sm:$0xff]   ;;  %v2272_v37 = vld [vmem:[%s3047_s3 + $0x278] sm:$0xff]  }
  0xee   :  { %v1988_v44 = vpop.f32.mrf.mxu0  ;;  %v2273_v38 = vld [vmem:[%s3047_s3 + $0x2b8] sm:$0xff]   ;;  %2075 = vmatprep.subr.bf16.mxu0 %v2272_v37  ;;  %v2283_v39 = vld [vmem:[%s3047_s3 + $0x220] sm:$0xff]  }
  0xef   :  { %v226_v46 = vadd.f32 %v1987_v41, %v1773_v31  ;;  %719 = vmatprep.mubr.bf16.mxu1 %v383_v42  ;;  %v252_v53 = vsel %vm249_vm4, %v245_v49, %v246_v45  ;;  %v239_v3 = vsel %vm236_vm0, %v232_v0, %v233_v52  ;;  %v2285_v41 = vld [vmem:[%s3047_s3 + $0x298] sm:$0xff]  }
  0xf0   :  { %v1989_v47 = vpop.f32.mrf.mxu0  ;;  %v2286_v42 = vld [vmem:[%s3047_s3 + $0x218] sm:$0xff]  }
  0xf1   :  { %v247_v50 = vrot.slane %v226_v46, 1  ;;  %v1990_v51 = vadd.f32 %v1989_v47, %v1988_v44  ;;  %v234_v13 = vrot.slane %v226_v46, 7  ;;  %v2288_v44 = vld [vmem:[%s3047_s3 + $0x290] sm:$0xff]   ;;  %v2291_v47 = vld [vmem:[%s3047_s3 + $0x288] sm:$0xff]  }
  0xf3   :  { %v251_v55 = vsel %vm249_vm4, %v246_v45, %v247_v50  ;;  %v229_v56 = vadd.f32 %v1990_v51, %v1773_v31  ;;  %v238_v27 = vsel %vm236_vm0, %v233_v52, %v234_v13  ;;  %v2263_v31 = vld [vmem:[%s3047_s3 + $0x1a0] sm:$0xff]   ;;  %v2289_v45 = vld [vmem:[%s3047_s3 + $0x210] sm:$0xff]  }
  0xf4   :  { %v1849_v60 = vpack.c.bf16 %v251_v55, %v252_v53  ;;  %v2295_v51 = vld [vmem:[%s3047_s3 + $0x200] sm:$0xff]  }
  0xf5   :  { %v235_v1 = vrot.slane %v229_v56, 7  ;;  %v248_v2 = vrot.slane %v229_v56, 1  ;;  %v389_v9 = vpack.c.bf16 %v229_v56, %v226_v46  ;;  %v2290_v46 = vld [vmem:[%s3047_s3 + $0x248] sm:$0xff]  }
  0xf6   :  { %1850 = vmatmul.mubr.msk.bf16.vlgmr.msra.gmra.mxu0 %vm2615_vm7, %v1849_v60 }
  0xf7   :  { %v240_v4 = vsel %vm236_vm0, %v235_v1, %v232_v0  ;;  %1853 = vmatprep.mubr.msk.bf16.mxu0 %vm2620_vm8, %v1852_v14  ;;  %v250_v11 = vsel %vm249_vm4, %v247_v50, %v248_v2  ;;  %v253_v12 = vsel %vm249_vm4, %v248_v2, %v245_v49  ;;  %v237_v22 = vsel %vm236_vm0, %v234_v13, %v235_v1  ;;  %v2293_v49 = vld [vmem:[%s3047_s3 + $0x240] sm:$0xff]  }
  0xf8   :  { %v1840_v7 = vpack.c.bf16 %v239_v3, %v240_v4  ;;  %v1855_v16 = vpack.c.bf16 %v253_v12, %v250_v11  ;;  %v1843_v29 = vpack.c.bf16 %v237_v22, %v238_v27  ;;  %2076 = vmatpush3.bf16.msra.mxu0 %v2274_v57  ;;  %v2294_v50 = vld [vmem:[%s3047_s3 + $0x280] sm:$0xff]  }
  0xf9   :  { %2077 = vmatprep.subr.bf16.mxu0 %v2275_v58  ;;  %v1901_v14 = vld [vmem:[%s3050_s4 + $0x3] ss:$0 sm:$0xff] }
  0xfa   :  { %1841 = vmatmul.mubr.msk.bf16.vlgmr.msra.gmra.mxu1 %vm2553_vm3, %v1840_v7 }
  0xfb   :  { %2048 = vmatpush3.bf16.msra.mxu1 %v2257_v5  ;;  %727 = vmatprep.mubr.bf16.mxu1 %v389_v9  ;;  %v1790_v9 = vld [vmem:[%s3050_s4 + $0x1] ss:$0 sm:$0xff] }
  0xfc   :  { %2049 = vmatprep.subr.bf16.mxu1 %v2258_v8  ;;  %2078 = vmatpush3.bf16.msra.mxu0 %v2277_v10 }
  0xfe   :  { %1856 = vmatmul.mubr.msk.bf16.gmra.mxu0 %vm2645_vm10, %v1855_v16 }
  0xff   :  { %2050 = vmatpush3.bf16.msra.mxu1 %v2259_v15 }
 0x100   :  { %2051 = vmatprep.subr.bf16.mxu1 %v2260_v17 }
 0x102   :  { %1844 = vmatmul.mubr.msk.bf16.gmra.mxu1 %vm2620_vm8, %v1843_v29 }
 0x103   :  { %2052 = vmatpush3.bf16.msra.mxu1 %v2261_v28  ;;  %1859 = vmatprep.mubr.msk.bf16.mxu1 %vm2615_vm7, %v1858_v20  ;;  %v2269_v20 = vld [vmem:[%s3047_s3 + $0x188] sm:$0xff]  }
 0x104   :  { %2053 = vmatprep.subr.bf16.mxu1 %v2262_v30 }
 0x107   :  { %2054 = vmatpush3.bf16.msra.mxu1 %v2263_v31 }
 0x108   :  { %2055 = vmatprep.subr.bf16.mxu1 %v2264_v32 }
 0x10b   :  { %2056 = vmatpush3.bf16.msra.mxu1 %v2265_v33 }
 0x10c   :  { %2057 = vmatprep.subr.bf16.mxu1 %v2266_v34 }
 0x10f   :  { %2058 = vmatpush3.bf16.msra.mxu1 %v2267_v18 }
 0x110   :  { %2059 = vmatprep.subr.bf16.mxu1 %v2268_v19 }
 0x113   :  { %2060 = vmatpush3.bf16.msra.mxu1 %v2269_v20 }
 0x114   :  { %2061 = vmatprep.subr.bf16.mxu1 %v2270_v35 }
 0x117   :  { %2062 = vmatpush3.bf16.msra.mxu1 %v2271_v36 }
 0x118   :  { %2155 = vmatprep.subr.bf16.mxu1 %v2273_v38 }
 0x11a   :  { %818 = vmatmul.mubr.bf16.vlgmr.msra.gmra.mxu1 %v386_v21  ;;  %v2278_v21 = vld [vmem:[%s3047_s3 + $0x268] sm:$0xff]  }
 0x11b   :  { %1862 = vmatprep.mubr.msk.bf16.mxu1 %vm2645_vm10, %v1861_v26  ;;  %2156 = vmatpush3.bf16.msra.mxu1 %v2273_v38  ;;  %v2282_v26 = vld [vmem:[%s3047_s3 + $0x2a0] sm:$0xff]  }
 0x11c   :  { %2157 = vmatprep.subr.bf16.mxu1 %v2276_v61  ;;  %2079 = vmatprep.subr.bf16.mxu0 %v2278_v21 }
 0x11d   :  { %2080 = vmatpush3.bf16.msra.mxu0 %v2280_v24 }
 0x11e   :  { %2081 = vmatprep.subr.bf16.mxu0 %v2281_v25 }
 0x11f   :  { %2158 = vmatpush3.bf16.msra.mxu1 %v2276_v61 }
 0x121   :  { %2082 = vmatpush3.bf16.msra.mxu0 %v2283_v39 }
 0x122   :  { %826 = vmatmul.mubr.bf16.gmra.mxu1 %v392_v23  ;;  %v2279_v23 = vld [vmem:[%s3047_s3 + $0x2a8] sm:$0xff]   ;;  %2083 = vmatprep.subr.bf16.mxu0 %v2284_v40 }
 0x123   :  { %2159 = vmatprep.subr.bf16.mxu1 %v2279_v23 }
 0x124   :  { %2160 = vmatpush3.bf16.msra.mxu1 %v2279_v23 }
 0x125   :  { %2161 = vmatprep.subr.bf16.mxu1 %v2282_v26  ;;  %2084 = vmatpush3.bf16.msra.mxu0 %v2286_v42 }
 0x126   :  { %2085 = vmatprep.subr.bf16.mxu0 %v2287_v43 }
 0x128   :  { %2162 = vmatpush3.bf16.msra.mxu1 %v2282_v26 }
 0x129   :  { %2163 = vmatprep.subr.bf16.mxu1 %v2285_v41  ;;  %2086 = vmatpush3.bf16.msra.mxu0 %v2289_v45 }
 0x12a   :  { %2087 = vmatprep.subr.bf16.mxu0 %v2290_v46 }
 0x12c   :  { %2164 = vmatpush3.bf16.msra.mxu1 %v2285_v41 }
 0x12d   :  { %2165 = vmatprep.subr.bf16.mxu1 %v2288_v44  ;;  %2088 = vmatpush3.bf16.msra.mxu0 %v2292_v48 }
 0x12e   :  { %2089 = vmatprep.subr.bf16.mxu0 %v2293_v49 }
 0x130   :  { %2166 = vmatpush3.bf16.msra.mxu1 %v2288_v44 }
 0x131   :  { %2167 = vmatprep.subr.bf16.mxu1 %v2291_v47  ;;  %2090 = vmatpush3.bf16.msra.mxu0 %v2295_v51 }
 0x134   :  { %2168 = vmatpush3.bf16.msra.mxu1 %v2291_v47 }
 0x135   :  { %2169 = vmatprep.subr.bf16.mxu1 %v2294_v50 }
 0x138   :  { %2170 = vmatpush3.bf16.msra.mxu1 %v2294_v50 }
 0x1b6   :  { %v2035_v56 = vpop.f32.mrf.mxu0 }
 0x1b8   :  { %v2036_v63 = vpop.f32.mrf.mxu0 }
 0x1b9   :  { %v2037_v27 = vadd.f32 %v2036_v63, %v2035_v56 }
 0x1ba   :  { %v2007_v52 = vpop.f32.mrf.mxu1  ;;  %v2038_v1 = vpop.f32.mrf.mxu0 }
 0x1bc   :  { %v2008_v53 = vpop.f32.mrf.mxu1  ;;  %v2039_v3 = vpop.f32.mrf.mxu0 }
 0x1bd   :  { %v2009_v5 = vadd.f32 %v2008_v53, %v2007_v52  ;;  %v2040_v29 = vadd.f32 %v2039_v3, %v2038_v1 }
 0x1be   :  { %v2010_v55 = vpop.f32.mrf.mxu1  ;;  %v2041_v7 = vpop.f32.mrf.mxu0 }
 0x1bf   :  { %v722_v13 = vadd.f32 %v2009_v5, %v1790_v9 }
 0x1c0   :  { %v2011_v60 = vpop.f32.mrf.mxu1  ;;  %v2042_v15 = vpop.f32.mrf.mxu0 }
 0x1c1   :  { %v2012_v11 = vadd.f32 %v2011_v60, %v2010_v55  ;;  %v771_v32 = vadd.f32 %v2037_v27, %v722_v13  ;;  %v2043_v36 = vadd.f32 %v2042_v15, %v2041_v7  ;;  %v1863_v15 = vld [vmem:[%s3050_s4 + $0x2] ss:$0 sm:$0xff] }
 0x1c2   :  { %v2013_v0 = vpop.f32.mrf.mxu1  ;;  %v2044_v31 = vpop.f32.mrf.mxu0 }
 0x1c3   :  { %v725_v17 = vadd.f32 %v2012_v11, %v1790_v9 }
 0x1c4   :  { %v2014_v2 = vpop.f32.mrf.mxu1  ;;  %v2045_v57 = vpop.f32.mrf.mxu0 }
 0x1c5   :  { %v2015_v22 = vadd.f32 %v2014_v2, %v2013_v0  ;;  %v774_v19 = vadd.f32 %v2040_v29, %v725_v17  ;;  %v2046_v25 = vadd.f32 %v2045_v57, %v2044_v31 }
 0x1c6   :  { %v2016_v4 = vpop.f32.mrf.mxu1 }
 0x1c7   :  { %v730_v34 = vadd.f32 %v2015_v22, %v1790_v9 }
 0x1c8   :  { %v2017_v8 = vpop.f32.mrf.mxu1 }
 0x1c9   :  { %v2018_v18 = vadd.f32 %v2017_v8, %v2016_v4  ;;  %v779_v10 = vadd.f32 %v2043_v36, %v730_v34 }
 0x1cb   :  { %v733_v61 = vadd.f32 %v2018_v18, %v1790_v9 }
 0x1cd   :  { %v782_v43 = vadd.f32 %v2046_v25, %v733_v61 }
 0x1da   :  { %v2063_v12 = vpop.f32.mrf.mxu1 }
 0x1dc   :  { %v2064_v16 = vpop.f32.mrf.mxu1 }
 0x1dd   :  { %v2065_v30 = vadd.f32 %v2064_v16, %v2063_v12 }
 0x1de   :  { %v2066_v28 = vpop.f32.mrf.mxu1 }
 0x1df   :  { %v2787_v37 = vadd.f32 %v2065_v30, %v771_v32 }
 0x1e0   :  { %v2067_v33 = vpop.f32.mrf.mxu1 }
 0x1e1   :  { %v2068_v20 = vadd.f32 %v2067_v33, %v2066_v28  ;;  %v846_v41 = vrot.slane %v2787_v37, 1  ;;  %v834_v50 = vrot.slane %v2787_v37, 7 }
 0x1e2   :  { %v2069_v35 = vpop.f32.mrf.mxu1 }
 0x1e3   :  { %v2789_v38 = vadd.f32 %v2068_v20, %v774_v19 }
 0x1e4   :  { %v2070_v58 = vpop.f32.mrf.mxu1 }
 0x1e5   :  { %v2071_v21 = vadd.f32 %v2070_v58, %v2069_v35  ;;  %v907_v23 = vpack.c.bf16 %v2789_v38, %v2787_v37  ;;  %v847_v26 = vrot.slane %v2789_v38, 1  ;;  %v835_v45 = vrot.slane %v2789_v38, 7 }
 0x1e6   :  { %v2072_v24 = vpop.f32.mrf.mxu1 }
 0x1e7   :  { %v2794_v39 = vadd.f32 %v2071_v21, %v779_v10  ;;  %1093 = vmatprep.mubr.bf16.mxu0 %v907_v23  ;;  %v852_v48 = vsel %vm249_vm4, %v846_v41, %v847_v26  ;;  %v840_v53 = vsel %vm236_vm0, %v834_v50, %v835_v45 }
 0x1e8   :  { %v2073_v40 = vpop.f32.mrf.mxu1 }
 0x1e9   :  { %v848_v42 = vrot.slane %v2794_v39, 1  ;;  %v2074_v44 = vadd.f32 %v2073_v40, %v2072_v24  ;;  %v836_v2 = vrot.slane %v2794_v39, 7 }
 0x1eb   :  { %v2799_v46 = vadd.f32 %v2074_v44, %v782_v43  ;;  %v851_v47 = vsel %vm249_vm4, %v847_v26, %v848_v42  ;;  %v839_v4 = vsel %vm236_vm0, %v835_v45, %v836_v2 }
 0x1ec   :  { %v1895_v49 = vpack.c.bf16 %v851_v47, %v852_v48 }
 0x1ed   :  { %v837_v51 = vrot.slane %v2799_v46, 7  ;;  %v849_v52 = vrot.slane %v2799_v46, 1  ;;  %v910_v1 = vpack.c.bf16 %v2799_v46, %v2794_v39 }
 0x1ee   :  { %2171 = vmatprep.mubr.msk.bf16.mxu1 %vm2615_vm7, %v1895_v49 }
 0x1ef   :  { %v841_v55 = vsel %vm236_vm0, %v837_v51, %v834_v50  ;;  %v850_v56 = vsel %vm249_vm4, %v848_v42, %v849_v52  ;;  %v853_v60 = vsel %vm249_vm4, %v849_v52, %v846_v41  ;;  %v838_v3 = vsel %vm236_vm0, %v836_v2, %v837_v51 }
 0x1f0   :  { %v1889_v63 = vpack.c.bf16 %v840_v53, %v841_v55  ;;  %v1898_v0 = vpack.c.bf16 %v853_v60, %v850_v56  ;;  %v1892_v5 = vpack.c.bf16 %v838_v3, %v839_v4 }
 0x1f2   :  { %1890 = vmatmul.mubr.msk.bf16.vlgmr.msra.gmra.mxu0 %vm2553_vm3, %v1889_v63  ;;  %2172 = vmatmul.mubr.msk.bf16.vlgmr.msra.gmra.mxu1 %vm2645_vm10, %v1898_v0 }
 0x1f3   :  { %1101 = vmatprep.mubr.bf16.mxu0 %v910_v1 }
 0x1fa   :  { %1893 = vmatmul.mubr.msk.bf16.gmra.mxu0 %vm2620_vm8, %v1892_v5 }
 0x2b2   :  { %v2091_v7 = vpop.f32.mrf.mxu0  ;;  %v2173_v8 = vpop.f32.mrf.mxu1 }
 0x2b4   :  { %v2092_v9 = vpop.f32.mrf.mxu0  ;;  %v1144_v11 = vpop.f32.mrf.mxu1 }
 0x2b5   :  { %v2093_v13 = vadd.f32 %v2092_v9, %v2091_v7  ;;  %v2296_v7 = vld [vmem:[%s3047_s3 + $0x338] sm:$0xff]  }
 0x2b6   :  { %v2094_v12 = vpop.f32.mrf.mxu0  ;;  %v2174_v16 = vpop.f32.mrf.mxu1  ;;  %v2298_v9 = vld [vmem:[%s3047_s3 + $0x378] sm:$0xff]   ;;  %2113 = vmatprep.subr.bf16.mxu0 %v2296_v7 }
 0x2b7   :  { %v1096_v28 = vadd.f32 %v2093_v13, %v1863_v15  ;;  %2175 = vmatprep.subr.bf16.mxu1 %v2298_v9  ;;  %v2299_v13 = vld [vmem:[%s3047_s3 + $0x330] sm:$0xff]  }
 0x2b8   :  { %v2095_v17 = vpop.f32.mrf.mxu0  ;;  %v1147_v30 = vpop.f32.mrf.mxu1  ;;  %2176 = vmatpush3.bf16.msra.mxu1 %v2298_v9 }
 0x2b9   :  { %v2096_v22 = vadd.f32 %v2095_v17, %v2094_v12  ;;  %v2836_v18 = vadd.f32 %v1144_v11, %v1096_v28  ;;  %v2303_v28 = vld [vmem:[%s3047_s3 + $0x2e8] sm:$0xff]  }
 0x2ba   :  { %v2097_v27 = vpop.f32.mrf.mxu0 }
 0x2bb   :  { %v1099_v29 = vadd.f32 %v2096_v22, %v1863_v15  ;;  %v1170_v58 = vmul.f32 %v2836_v18, %v2836_v18 }
 0x2bc   :  { %v2098_v31 = vpop.f32.mrf.mxu0 }
 0x2bd   :  { %v2834_v32 = vadd.f32 %v1147_v30, %v1099_v29  ;;  %v2099_v33 = vadd.f32 %v2098_v31, %v2097_v27  ;;  %v2302_v27 = vld [vmem:[%s3047_s3 + $0x328] sm:$0xff]   ;;  %v2305_v30 = vld [vmem:[%s3047_s3 + $0x320] sm:$0xff]  }
 0x2be   :  { %v2100_v34 = vpop.f32.mrf.mxu0  ;;  %v2304_v29 = vld [vmem:[%s3047_s3 + $0x368] sm:$0xff]   ;;  %v2306_v31 = vld [vmem:[%s3047_s3 + $0x2e0] sm:$0xff]  }
 0x2bf   :  { %v1104_v19 = vadd.f32 %v2099_v33, %v1863_v15  ;;  %v1171_v35 = vmul.f32 %v2834_v32, %v2834_v32  ;;  %v1161_v61 = vadd.f32 %v2834_v32, %v2836_v18  ;;  %v2307_v33 = vld [vmem:[%s3047_s3 + $0x360] sm:$0xff]  }
 0x2c0   :  { %v2101_v20 = vpop.f32.mrf.mxu0 }
 0x2c1   :  { %v2840_v36 = vadd.f32 %v2173_v8, %v1104_v19  ;;  %v2102_v57 = vadd.f32 %v2101_v20, %v2100_v34  ;;  %v1174_v23 = vadd.f32 %v1171_v35, %v1170_v58  ;;  %v2297_v8 = vld [vmem:[%s3047_s3 + $0x2f8] sm:$0xff]   ;;  %v2311_v35 = vld [vmem:[%s3047_s3 + $0x310] sm:$0xff]  }
 0x2c2   :  { %2114 = vmatpush3.bf16.msra.mxu0 %v2297_v8  ;;  %v2308_v34 = vld [vmem:[%s3047_s3 + $0x318] sm:$0xff]   ;;  %v2313_v58 = vld [vmem:[%s3047_s3 + $0x350] sm:$0xff]  }
 0x2c3   :  { %v1172_v10 = vmul.f32 %v2840_v36, %v2840_v36  ;;  %v1107_v21 = vadd.f32 %v2102_v57, %v1863_v15  ;;  %v1162_v24 = vadd.f32 %v1161_v61, %v2840_v36  ;;  %v2300_v15 = vld [vmem:[%s3047_s3 + $0x2f0] sm:$0xff]   ;;  %2115 = vmatprep.subr.bf16.mxu0 %v2299_v13  ;;  %v2309_v19 = vld [vmem:[%s3047_s3 + $0x2d8] sm:$0xff]   ;;  %v2314_v61 = vld [vmem:[%s3047_s3 + $0x308] sm:$0xff]  }
 0x2c4   :  { %v2310_v20 = vld [vmem:[%s3047_s3 + $0x358] sm:$0xff]   ;;  %v2312_v57 = vld [vmem:[%s3047_s3 + $0x2d0] sm:$0xff]  }
 0x2c5   :  { %v2849_v25 = vadd.f32 %v2174_v16, %v1107_v21  ;;  %v1175_v26 = vadd.f32 %v1174_v23, %v1172_v10  ;;  %v2301_v16 = vld [vmem:[%s3047_s3 + $0x370] sm:$0xff]   ;;  %v2316_v10 = vld [vmem:[%s3047_s3 + $0x348] sm:$0xff]   ;;  %v2317_v23 = vld [vmem:[%s3047_s3 + $0x300] sm:$0xff]  }
 0x2c6   :  { %2116 = vmatpush3.bf16.msra.mxu0 %v2300_v15  ;;  %2177 = vmatprep.subr.bf16.mxu1 %v2301_v16  ;;  %v2315_v21 = vld [vmem:[%s3047_s3 + $0x2c8] sm:$0xff]  }
 0x2c7   :  { %v1173_v40 = vmul.f32 %v2849_v25, %v2849_v25  ;;  %v1163_v41 = vadd.f32 %v1162_v24, %v2849_v25  ;;  %2178 = vmatpush3.bf16.msra.mxu1 %v2301_v16  ;;  %2117 = vmatprep.subr.bf16.mxu0 %v2302_v27  ;;  %v2318_v24 = vld [vmem:[%s3047_s3 + $0x2c0] sm:$0xff]  }
 0x2c8   :  { %2179 = vmatprep.subr.bf16.mxu1 %v2304_v29 }
 0x2c9   :  { %v1164_v42 = vrot.slane %v1163_v41, 4  ;;  %v1176_v43 = vadd.f32 %v1175_v26, %v1173_v40  ;;  %v2319_v26 = vld [vmem:[%s3047_s3 + $0x340] sm:$0xff]  }
 0x2ca   :  { %2118 = vmatpush3.bf16.msra.mxu0 %v2303_v28 }
 0x2cb   :  { %v1165_v44 = vadd.f32 %v1164_v42, %v1163_v41  ;;  %v1177_v45 = vrot.slane %v1176_v43, 4  ;;  %2180 = vmatpush3.bf16.msra.mxu1 %v2304_v29  ;;  %2119 = vmatprep.subr.bf16.mxu0 %v2305_v30 }
 0x2cc   :  { %2181 = vmatprep.subr.bf16.mxu1 %v2307_v33 }
 0x2cd   :  { %v1166_v47 = vrot.slane %v1165_v44, 2  ;;  %v1178_v48 = vadd.f32 %v1177_v45, %v1176_v43 }
 0x2ce   :  { %2120 = vmatpush3.bf16.msra.mxu0 %v2306_v31 }
 0x2cf   :  { %v1167_v49 = vadd.f32 %v1166_v47, %v1165_v44  ;;  %v1179_v50 = vrot.slane %v1178_v48, 2  ;;  %2182 = vmatpush3.bf16.msra.mxu1 %v2307_v33  ;;  %2121 = vmatprep.subr.bf16.mxu0 %v2308_v34 }
 0x2d0   :  { %2183 = vmatprep.subr.bf16.mxu1 %v2310_v20 }
 0x2d1   :  { %v1168_v51 = vrot.slane %v1167_v49, 1  ;;  %v1180_v52 = vadd.f32 %v1179_v50, %v1178_v48  ;;  %v2935_v50 = vsub.s32 0, %v2508_v54 }
 0x2d2   :  { %2122 = vmatpush3.bf16.msra.mxu0 %v2309_v19 }
 0x2d3   :  { %v1169_v53 = vadd.f32 %v1168_v51, %v1167_v49  ;;  %v1181_v55 = vrot.slane %v1180_v52, 1  ;;  %2184 = vmatpush3.bf16.msra.mxu1 %v2310_v20  ;;  %2123 = vmatprep.subr.bf16.mxu0 %v2311_v35 }
 0x2d4   :  { %2185 = vmatprep.subr.bf16.mxu1 %v2313_v58 }
 0x2d5   :  { %1183 = vrot.lane.b32.xlu0 %v1169_v53, %s2327_s14  ;;  %v1182_v56 = vadd.f32 %v1181_v55, %v1180_v52  ;;  %v1159_v52 = vld [vmem:[%s3050_s4 + $0x5] sm:$0x1] }
 0x2d6   :  { %2124 = vmatpush3.bf16.msra.mxu0 %v2312_v57 }
 0x2d7   :  { %2186 = vmatpush3.bf16.msra.mxu1 %v2313_v58  ;;  %2125 = vmatprep.subr.bf16.mxu0 %v2314_v61 }
 0x2d8   :  { %2187 = vmatprep.subr.bf16.mxu1 %v2316_v10 }
 0x2d9   :  { %1186 = vrot.lane.b32.xlu0 %v1182_v56, %s2327_s14 }
 0x2da   :  { %2126 = vmatpush3.bf16.msra.mxu0 %v2315_v21 }
 0x2db   :  { %2188 = vmatpush3.bf16.msra.mxu1 %v2316_v10  ;;  %2127 = vmatprep.subr.bf16.mxu0 %v2317_v23 }
 0x2dc   :  { %2189 = vmatprep.subr.bf16.mxu1 %v2319_v26 }
 0x2de   :  { %2128 = vmatpush3.bf16.msra.mxu0 %v2318_v24 }
 0x2df   :  { %2190 = vmatpush3.bf16.msra.mxu1 %v2319_v26 }
 0x347   :  { %v1184_v60 = vpop.permute.xlu0 %1183 }
 0x348   :  { %v1185_v63 = vadd.f32 %v1184_v60, %v1169_v53 }
 0x34a   :  { %1189 = vrot.lane.b32.xlu1 %v1185_v63, %s2328_s15 }
 0x34b   :  { %v1187_v0 = vpop.permute.xlu0 %1186 }
 0x34c   :  { %v1188_v1 = vadd.f32 %v1187_v0, %v1182_v56 }
 0x34e   :  { %1192 = vrot.lane.b32.xlu1 %v1188_v1, %s2328_s15 }
 0x3bc   :  { %v1190_v2 = vpop.permute.xlu1 %1189 }
 0x3bd   :  { %v1191_v3 = vadd.f32 %v1190_v2, %v1185_v63  ;;  %v1900_v2 = vld [vmem:[%s3050_s4 + $0x6] ss:$0 sm:$0xff] }
 0x3bf   :  { %1195 = vrot.lane.b32.xlu0 %v1191_v3, %s2329_s16 }
 0x3c0   :  { %v1193_v4 = vpop.permute.xlu1 %1192 }
 0x3c1   :  { %v1194_v5 = vadd.f32 %v1193_v4, %v1188_v1 }
 0x3c3   :  { %1198 = vrot.lane.b32.xlu1 %v1194_v5, %s2329_s16 }
 0x431   :  { %v1196_v11 = vpop.permute.xlu0 %1195 }
 0x432   :  { %v1197_v12 = vadd.f32 %v1196_v11, %v1191_v3 }
 0x434   :  { %1201 = vrot.lane.b32.xlu0 %v1197_v12, %s2330_s25 }
 0x435   :  { %v1199_v17 = vpop.permute.xlu1 %1198 }
 0x436   :  { %v1200_v22 = vadd.f32 %v1199_v17, %v1194_v5 }
 0x438   :  { %1204 = vrot.lane.b32.xlu1 %v1200_v22, %s2330_s25 }
 0x4a6   :  { %v1202_v40 = vpop.permute.xlu0 %1201 }
 0x4a7   :  { %v1203_v41 = vadd.f32 %v1202_v40, %v1197_v12 }
 0x4a9   :  { %v1207_v42 = vmul.f32 0.001953125, %v1203_v41 }
 0x4aa   :  { %v1205_v43 = vpop.permute.xlu1 %1204 }
 0x4ab   :  { %v1206_v44 = vadd.f32 %v1205_v43, %v1200_v22  ;;  %v1209_v45 = vmul.f32 %v1207_v42, %v1207_v42  ;;  %v1216_v51 = vrot.slane %v1207_v42, %v2935_v50 }
 0x4ad   :  { %v1208_v47 = vmul.f32 0.001953125, %v1206_v44  ;;  %v1217_v56 = vsub.f32 %v2836_v18, %v1216_v51  ;;  %v1218_v60 = vsub.f32 %v2834_v32, %v1216_v51  ;;  %v1219_v63 = vsub.f32 %v2840_v36, %v1216_v51 }
 0x4ae   :  { %v1220_v0 = vsub.f32 %v2849_v25, %v1216_v51 }
 0x4af   :  { %v1210_v48 = vsub.f32 %v1208_v47, %v1209_v45 }
 0x4b1   :  { %v1211_v49 = vadd.f32 1e-05, %v1210_v48 }
 0x4b3   :  { %2322 = vrsqrt.f32 %v1211_v49 }
 0x4c0   :  { %v2323_v53 = vpop.eup %2322 }
 0x4c1   :  { %v1221_v55 = vmul.f32 %v2323_v53, %v1159_v52 }
 0x4c3   :  { %v1225_v1 = vrot.slane %v1221_v55, %v2935_v50 }
 0x4c5   :  { %v1226_v3 = vmul.f32 %v1225_v1, %v1217_v56  ;;  %v1227_v4 = vmul.f32 %v1225_v1, %v1218_v60  ;;  %v1228_v5 = vmul.f32 %v1225_v1, %v1219_v63  ;;  %v1229_v7 = vmul.f32 %v1225_v1, %v1220_v0 }
 0x4c7   :  { %v1234_v8 = vadd.f32 %v1900_v2, %v1226_v3  ;;  %v1235_v9 = vadd.f32 %v1900_v2, %v1227_v4  ;;  %v1236_v11 = vadd.f32 %v1900_v2, %v1228_v5  ;;  %v1237_v18 = vadd.f32 %v1900_v2, %v1229_v7 }
 0x4c9   :  { %v1238_v12 = vmax.f32 %v1234_v8, 0.0  ;;  %v1239_v32 = vmax.f32 %v1235_v9, 0.0  ;;  %v1241_v13 = vmax.f32 %v1237_v18, 0.0  ;;  %v1240_v36 = vmax.f32 %v1236_v11, 0.0 }
 0x4cb   :  { %v1242_v15 = vrot.slane %v1238_v12, 7  ;;  %v1243_v25 = vrot.slane %v1239_v32, 7  ;;  %v1245_v16 = vrot.slane %v1241_v13, 7  ;;  %v1315_v17 = vpack.c.bf16 %v1239_v32, %v1238_v12 }
 0x4cc   :  { %v1254_v22 = vrot.slane %v1238_v12, 1  ;;  %v1255_v27 = vrot.slane %v1239_v32, 1  ;;  %v1256_v28 = vrot.slane %v1240_v36, 1  ;;  %v1257_v31 = vrot.slane %v1241_v13, 1 }
 0x4cd   :  { %v1248_v29 = vsel %vm236_vm0, %v1242_v15, %v1243_v25  ;;  %v1249_v30 = vsel %vm236_vm0, %v1245_v16, %v1242_v15  ;;  %1501 = vmatprep.mubr.bf16.mxu0 %v1315_v17  ;;  %v1318_v20 = vpack.c.bf16 %v1241_v13, %v1240_v36  ;;  %v1244_v61 = vrot.slane %v1240_v36, 7 }
 0x4ce   :  { %v1927_v33 = vpack.c.bf16 %v1248_v29, %v1249_v30  ;;  %v1259_v34 = vsel %vm249_vm4, %v1255_v27, %v1256_v28  ;;  %v1260_v19 = vsel %vm249_vm4, %v1254_v22, %v1255_v27  ;;  %v1258_v57 = vsel %vm249_vm4, %v1256_v28, %v1257_v31 }
 0x4cf   :  { %v1933_v35 = vpack.c.bf16 %v1259_v34, %v1260_v19  ;;  %v1261_v58 = vsel %vm249_vm4, %v1257_v31, %v1254_v22  ;;  %v1246_v21 = vsel %vm236_vm0, %v1244_v61, %v1245_v16  ;;  %v1247_v23 = vsel %vm236_vm0, %v1243_v25, %v1244_v61  ;;  %v2321_v34 = vld [vmem:[%s3047_s3 + $0x380] sm:$0xff]  }
 0x4d0   :  { %1928 = vmatmul.mubr.msk.bf16.vlgmr.msra.gmra.mxu0 %vm2553_vm3, %v1927_v33  ;;  %v1936_v10 = vpack.c.bf16 %v1261_v58, %v1258_v57  ;;  %v1930_v24 = vpack.c.bf16 %v1246_v21, %v1247_v23  ;;  %v2320_v33 = vld [vmem:[%s3047_s3 + $0x388] sm:$0xff]   ;;  %v1654_v19 = vld [vmem:[%s3051_s2] sm:$0xff]  ;;  %v1656_v57 = vld [vmem:[%s3051_s2 + $0x10] sm:$0xff] }
 0x4d1   :  { %2191 = vmatprep.mubr.msk.bf16.mxu1 %vm2615_vm7, %v1933_v35  ;;  %1509 = vmatprep.mubr.bf16.mxu0 %v1318_v20  ;;  %v1655_v20 = vld [vmem:[%s3051_s2 + $0x8] sm:$0xff]  ;;  %v1657_v58 = vld [vmem:[%s3051_s2 + $0x18] sm:$0xff] }
 0x4d2   :  { %2192 = vmatmul.mubr.msk.bf16.vlgmr.msra.gmra.mxu1 %vm2645_vm10, %v1936_v10  ;;  %2195 = vmatprep.subr.bf16.mxu1 %v2320_v33  ;;  %v1662_v35 = vpack.c.bf16 %v1655_v20, %v1654_v19  ;;  %v1663_v10 = vpack.c.bf16 %v1657_v58, %v1656_v57 }
 0x4d3   :  { %2196 = vmatpush3.bf16.msra.mxu1 %v2320_v33 }
 0x4d4   :  { %2197 = vmatprep.subr.bf16.mxu1 %v2321_v34  ;;  %2199 = vmatprep.mubr.msk.bf16.mxu1 %vm1681_vm11, %v1662_v35 }
 0x4d7   :  { %2198 = vmatpush3.bf16.msra.mxu1 %v2321_v34 }
 0x4d8   :  { %1931 = vmatmul.mubr.msk.bf16.gmra.mxu0 %vm2620_vm8, %v1930_v24 }
 0x4da   :  { %2200 = vmatmul.mubr.msk.bf16.vlgmr.msra.gmra.mxu1 %vm1681_vm11, %v1663_v10 }
 0x590   :  { %v2129_v6 = vpop.f32.mrf.mxu0 }
 0x592   :  { %v2193_v26 = vpop.f32.mrf.mxu1  ;;  %v2130_v40 = vpop.f32.mrf.mxu0 }
 0x593   :  { %v2131_v42 = vadd.f32 %v2130_v40, %v2129_v6 }
 0x594   :  { %v1552_v41 = vpop.f32.mrf.mxu1  ;;  %v2132_v59 = vpop.f32.mrf.mxu0 }
 0x595   :  { %v1504_v54 = vadd.f32 %v2131_v42, %v1901_v14 }
 0x596   :  { %v2194_v43 = vpop.f32.mrf.mxu1  ;;  %v2133_v44 = vpop.f32.mrf.mxu0 }
 0x597   :  { %v2134_v45 = vadd.f32 %v2133_v44, %v2132_v59  ;;  %v2978_v55 = vadd.f32 %v1552_v41, %v1504_v54 }
 0x598   :  { %v2135_v47 = vpop.f32.mrf.mxu0  ;;  %v1555_v49 = vpop.f32.mrf.mxu1 }
 0x599   :  { %v1507_v48 = vadd.f32 %v2134_v45, %v1901_v14  ;;  %v1578_v2 = vmul.f32 %v2978_v55, %v2978_v55 }
 0x59a   :  { %v2136_v51 = vpop.f32.mrf.mxu0 }
 0x59b   :  { %v2976_v62 = vadd.f32 %v1555_v49, %v1507_v48  ;;  %v2137_v52 = vadd.f32 %v2136_v51, %v2135_v47 }
 0x59c   :  { %v2138_v53 = vpop.f32.mrf.mxu0 }
 0x59d   :  { %v1512_v56 = vadd.f32 %v2137_v52, %v1901_v14  ;;  %v1579_v63 = vmul.f32 %v2976_v62, %v2976_v62  ;;  %v1569_v3 = vadd.f32 %v2976_v62, %v2978_v55 }
 0x59e   :  { %v2139_v60 = vpop.f32.mrf.mxu0 }
 0x59f   :  { %v2982_v0 = vadd.f32 %v2193_v26, %v1512_v56  ;;  %v2140_v1 = vadd.f32 %v2139_v60, %v2138_v53  ;;  %v1582_v7 = vadd.f32 %v1579_v63, %v1578_v2  ;;  %v2201_v56 = vpop.f32.mrf.mxu1 }
 0x5a1   :  { %v1580_v4 = vmul.f32 %v2982_v0, %v2982_v0  ;;  %v1515_v5 = vadd.f32 %v2140_v1, %v1901_v14  ;;  %v1570_v8 = vadd.f32 %v1569_v3, %v2982_v0  ;;  %v1722_v60 = vpop.f32.mrf.mxu1  ;;  %v1567_v1 = vld [vmem:[%s3050_s4 + $0x7] sm:$0x1] }
 0x5a3   :  { %v2991_v9 = vadd.f32 %v2194_v43, %v1515_v5  ;;  %v1583_v11 = vadd.f32 %v1582_v7, %v1580_v4  ;;  %v2202_v2 = vpop.f32.mrf.mxu1 }
 0x5a5   :  { %v1571_v18 = vadd.f32 %v1570_v8, %v2991_v9  ;;  %v1581_v12 = vmul.f32 %v2991_v9, %v2991_v9 }
 0x5a7   :  { %v1572_v32 = vrot.slane %v1571_v18, 4  ;;  %v1584_v13 = vadd.f32 %v1583_v11, %v1581_v12  ;;  %v1939_v12 = vld [vmem:[%s3050_s4 + $0x4] ss:$0 sm:$0xff] }
 0x5a9   :  { %v1573_v36 = vadd.f32 %v1572_v32, %v1571_v18  ;;  %v1585_v15 = vrot.slane %v1584_v13, 4  ;;  %v1725_v32 = vpop.f32.mrf.mxu1 }
 0x5ab   :  { %v1574_v25 = vrot.slane %v1573_v36, 2  ;;  %v1586_v16 = vadd.f32 %v1585_v15, %v1584_v13  ;;  %v1938_v13 = vld [vmem:[%s3050_s4 + $0x8] ss:$0 sm:$0xff] }
 0x5ad   :  { %v1575_v17 = vadd.f32 %v1574_v25, %v1573_v36  ;;  %v1587_v22 = vrot.slane %v1586_v16, 2 }
 0x5af   :  { %v1576_v27 = vrot.slane %v1575_v17, 1  ;;  %v1588_v28 = vadd.f32 %v1587_v22, %v1586_v16  ;;  %v1723_v16 = vadd.f32 %v1939_v12, %v1722_v60 }
 0x5b1   :  { %v1577_v29 = vadd.f32 %v1576_v27, %v1575_v17  ;;  %v1589_v30 = vrot.slane %v1588_v28, 1  ;;  %v1726_v17 = vadd.f32 %v1939_v12, %v1725_v32  ;;  %v1737_v34 = vmax.f32 %v1723_v16, 0.0 }
 0x5b3   :  { %1591 = vrot.lane.b32.xlu0 %v1577_v29, %s2327_s14  ;;  %v1590_v31 = vadd.f32 %v1589_v30, %v1588_v28  ;;  %v1738_v20 = vmax.f32 %v1726_v17, 0.0 }
 0x5b5   :  { %1594 = vrot.lane.b32.xlu1 %v1590_v31, %s2327_s14 }
 0x625   :  { %v1592_v61 = vpop.permute.xlu0 %1591 }
 0x626   :  { %v1593_v21 = vadd.f32 %v1592_v61, %v1577_v29 }
 0x627   :  { %v1595_v23 = vpop.permute.xlu1 %1594 }
 0x628   :  { %v1596_v24 = vadd.f32 %v1595_v23, %v1590_v31  ;;  %1597 = vrot.lane.b32.xlu0 %v1593_v21, %s2328_s15 }
 0x62a   :  { %1600 = vrot.lane.b32.xlu1 %v1596_v24, %s2328_s15 }
 0x69a   :  { %v1598_v6 = vpop.permute.xlu0 %1597 }
 0x69b   :  { %v1599_v26 = vadd.f32 %v1598_v6, %v1593_v21 }
 0x69c   :  { %v1601_v40 = vpop.permute.xlu1 %1600 }
 0x69d   :  { %v1602_v41 = vadd.f32 %v1601_v40, %v1596_v24  ;;  %1603 = vrot.lane.b32.xlu0 %v1599_v26, %s2329_s16 }
 0x69f   :  { %1606 = vrot.lane.b32.xlu1 %v1602_v41, %s2329_s16 }
 0x70f   :  { %v1604_v59 = vpop.permute.xlu0 %1603 }
 0x710   :  { %v1605_v42 = vadd.f32 %v1604_v59, %v1599_v26 }
 0x711   :  { %v1607_v14 = vpop.permute.xlu1 %1606 }
 0x712   :  { %v1608_v43 = vadd.f32 %v1607_v14, %v1602_v41  ;;  %1609 = vrot.lane.b32.xlu0 %v1605_v42, %s2330_s25 }
 0x714   :  { %1612 = vrot.lane.b32.xlu1 %v1608_v43, %s2330_s25 }
 0x784   :  { %v1610_v44 = vpop.permute.xlu0 %1609 }
 0x785   :  { %v1611_v45 = vadd.f32 %v1610_v44, %v1605_v42 }
 0x786   :  { %v1613_v47 = vpop.permute.xlu1 %1612 }
 0x787   :  { %v1615_v54 = vmul.f32 0.001953125, %v1611_v45  ;;  %v1614_v48 = vadd.f32 %v1613_v47, %v1608_v43 }
 0x789   :  { %v1617_v49 = vmul.f32 %v1615_v54, %v1615_v54  ;;  %v1616_v51 = vmul.f32 0.001953125, %v1614_v48  ;;  %v1624_v63 = vrot.slane %v1615_v54, %v2935_v50 }
 0x78b   :  { %v1618_v52 = vsub.f32 %v1616_v51, %v1617_v49  ;;  %v1625_v5 = vsub.f32 %v2978_v55, %v1624_v63  ;;  %v1626_v7 = vsub.f32 %v2976_v62, %v1624_v63  ;;  %v1627_v8 = vsub.f32 %v2982_v0, %v1624_v63 }
 0x78c   :  { %v1628_v11 = vsub.f32 %v2991_v9, %v1624_v63  ;;  %v1731_v62 = vadd.f32 %v2201_v56, %v1939_v12  ;;  %v1734_v0 = vadd.f32 %v2202_v2, %v1939_v12 }
 0x78d   :  { %v1619_v53 = vadd.f32 1e-05, %v1618_v52 }
 0x78e   :  { %v1739_v33 = vmax.f32 %v1731_v62, 0.0  ;;  %v1740_v19 = vmax.f32 %v1734_v0, 0.0 }
 0x78f   :  { %2324 = vrsqrt.f32 %v1619_v53 }
 0x79c   :  { %v2325_v3 = vpop.eup %2324 }
 0x79d   :  { %v1629_v4 = vmul.f32 %v2325_v3, %v1567_v1 }
 0x79f   :  { %v1633_v18 = vrot.slane %v1629_v4, %v2935_v50 }
 0x7a1   :  { %v1636_v36 = vmul.f32 %v1633_v18, %v1627_v8  ;;  %v1634_v15 = vmul.f32 %v1633_v18, %v1625_v5  ;;  %v1637_v55 = vmul.f32 %v1633_v18, %v1628_v11  ;;  %v1635_v25 = vmul.f32 %v1633_v18, %v1626_v7 }
 0x7a3   :  { %v1644_v9 = vadd.f32 %v1938_v13, %v1636_v36  ;;  %v1642_v22 = vadd.f32 %v1938_v13, %v1634_v15  ;;  %v1645_v50 = vadd.f32 %v1938_v13, %v1637_v55  ;;  %v1643_v27 = vadd.f32 %v1938_v13, %v1635_v25 }
 0x7a5   :  { %v1648_v28 = vadd.f32 %v1644_v9, %v2794_v39  ;;  %v1646_v29 = vadd.f32 %v1642_v22, %v2787_v37  ;;  %v1649_v30 = vadd.f32 %v1645_v50, %v2799_v46  ;;  %v1647_v31 = vadd.f32 %v1643_v27, %v2789_v38 }
 0x7a7   :  { %v1652_v35 = vmax.f32 %v1648_v28, 0.0  ;;  %v1650_v57 = vmax.f32 %v1646_v29, 0.0  ;;  %v1653_v58 = vmax.f32 %v1649_v30, 0.0  ;;  %v1651_v61 = vmax.f32 %v1647_v31, 0.0 }
 0x7a9   :  { %v1743_v10 = vadd.f32 %v1739_v33, %v1652_v35  ;;  %v1741_v21 = vadd.f32 %v1737_v34, %v1650_v57  ;;  %v1744_v23 = vadd.f32 %v1740_v19, %v1653_v58  ;;  %v1742_v24 = vadd.f32 %v1738_v20, %v1651_v61 }
 0x7ab   :  { %v1747_v6 = vmax.f32 %v1743_v10, 0.0  ;;  %v1745_v39 = vmax.f32 %v1741_v21, 0.0  ;;  %v1748_v26 = vmax.f32 %v1744_v23, 0.0  ;;  %v1746_v37 = vmax.f32 %v1742_v24, 0.0 }
 0x7ad   :  { %v1960_v40 = vpack.c.bf16 %v1748_v26, %v1747_v6  ;;  %v1955_v46 = vpack.c.bf16 %v1746_v37, %v1745_v39 }
 0x7af   :  { %1962 = vst [vmem:[%s3052_s5 + $0x8] sm:$0xff] %v1960_v40   ;;  %1956 = vst [vmem:[%s3052_s5] sm:$0xff] %v1955_v46  }

</bundles_post_ra>
